<compile_context>
chip_gen: v6e
topology: v6e:2x2x1
jax: 0.10.0
libtpu: 0.0.40
codegen_flags: <defaults>
</compile_context>

<pallas_src>
import functools

import jax
import jax.numpy as jnp
from jax.experimental import pallas as pl
from jax.experimental.pallas import tpu as pltpu

LANES = 128
_VMEM_LIMIT = 32 * 1024 * 1024  # fits all three generations' scoped VMEM


def _round_up(x, m):
    return ((x + m - 1) // m) * m


# ---------------------------------------------------------------------------
# Pallas kernels
# ---------------------------------------------------------------------------
def _conv_relu_pool_kernel(p_ref, w_ref, b_ref, o_ref):
    """p_ref: (4, TM, K) pool-phase patches; w_ref: (K, 128); b_ref: (1, 128).

    out = relu(max_over_4_phases(patches @ w) + b)   (bias/relu commute w/ max)
    """
    w = w_ref[...]
    acc = jnp.dot(p_ref[0], w, preferred_element_type=jnp.float32)
    for t in range(1, 4):
        acc = jnp.maximum(acc, jnp.dot(p_ref[t], w, preferred_element_type=jnp.float32))
    acc = jnp.maximum(acc + b_ref[...], 0.0)
    o_ref[...] = acc.astype(o_ref.dtype)


def _fc_fused_kernel(x_ref, w1_ref, b1_ref, w2_ref, b2_ref, w3_ref, b3_ref, o_ref):
    """Fused fc1->relu->fc2->relu->fc3; all weights resident, no HBM intermediates."""
    h = jnp.dot(x_ref[...], w1_ref[...], preferred_element_type=jnp.float32) + b1_ref[...]
    h = jnp.maximum(h, 0.0)
    h = jnp.dot(h, w2_ref[...], preferred_element_type=jnp.float32) + b2_ref[...]
    h = jnp.maximum(h, 0.0)
    h = jnp.dot(h, w3_ref[...], preferred_element_type=jnp.float32) + b3_ref[...]
    o_ref[...] = h.astype(o_ref.dtype)


# ---------------------------------------------------------------------------
# Wrappers
# ---------------------------------------------------------------------------
def _im2col_pooled(x_nhwc, kh, kw):
    """NHWC -> (4, N*Hp*Wp, K) patch groups, one per 2x2 pool phase.

    K-order is (kh, kw, Cin). Built from strided slices of the small input,
    so the kh*kw-expanded tensor is written exactly once.
    """
    n, h, w, c = x_nhwc.shape
    ho, wo = h - kh + 1, w - kw + 1
    hp, wp = ho // 2, wo // 2
    groups = []
    for di in range(2):
        for dj in range(2):
            cols = [
                x_nhwc[:, i + di : i + di + 2 * hp : 2, j + dj : j + dj + 2 * wp : 2, :]
                for i in range(kh)
                for j in range(kw)
            ]
            g = jnp.concatenate(cols, axis=-1)          # (N, Hp, Wp, kh*kw*C)
            groups.append(g.reshape(n * hp * wp, kh * kw * c))
    return jnp.stack(groups, axis=0), hp, wp            # (4, N*Hp*Wp, K)


def conv_relu_pool(x_nhwc, w_kn, b_1n, cout, *, tile_m=256):
    """Valid 5x5 conv (stride 1) + ReLU + 2x2/2 max-pool, fused in one kernel.

    x_nhwc: (N, H, W, Cin); w_kn: (kh*kw*Cin, 128) zero-padded; b_1n: (1, 128).
    Returns NHWC pooled activation (N, Hp, Wp, cout).
    """
    n = x_nhwc.shape[0]
    p4, hp, wp = _im2col_pooled(x_nhwc, 5, 5)
    m, k = p4.shape[1], p4.shape[2]
    tm = min(tile_m, _round_up(m, 8))
    m_pad = _round_up(m, tm)
    if m_pad != m:
        p4 = jnp.pad(p4, ((0, 0), (0, m_pad - m), (0, 0)))
    npad = w_kn.shape[1]

    out = pl.pallas_call(
        _conv_relu_pool_kernel,
        out_shape=jax.ShapeDtypeStruct((m_pad, npad), jnp.float32),
        grid=(m_pad // tm,),
        in_specs=[
            pl.BlockSpec((4, tm, k), lambda i: (0, i, 0)),   # only patches are tiled
            pl.BlockSpec((k, npad), lambda i: (0, 0)),       # weight resident
            pl.BlockSpec((1, npad), lambda i: (0, 0)),       # bias resident
        ],
        out_specs=pl.BlockSpec((tm, npad), lambda i: (i, 0)),  # lane-dense (128) store
        compiler_params=pltpu.CompilerParams(
            dimension_semantics=("parallel",),
            vmem_limit_bytes=_VMEM_LIMIT,
        ),
    )(p4, w_kn, b_1n)

    return out[: n * hp * wp, :cout].reshape(n, hp, wp, cout)


def fc_fused(x, w1, b1, w2, b2, w3, b3, n_out, *, tile_m=256):
    """x: (M, 400). Weights pre-padded to (K, 128); returns (M, n_out)."""
    m, k = x.shape
    tm = min(tile_m, _round_up(m, 8))
    m_pad = _round_up(m, tm)
    if m_pad != m:
        x = jnp.pad(x, ((0, m_pad - m), (0, 0)))
    npad = w3.shape[1]

    out = pl.pallas_call(
        _fc_fused_kernel,
        out_shape=jax.ShapeDtypeStruct((m_pad, npad), jnp.float32),
        grid=(m_pad // tm,),
        in_specs=[
            pl.BlockSpec((tm, k), lambda i: (i, 0)),
            pl.BlockSpec(w1.shape, lambda i: (0, 0)),
            pl.BlockSpec(b1.shape, lambda i: (0, 0)),
            pl.BlockSpec(w2.shape, lambda i: (0, 0)),
            pl.BlockSpec(b2.shape, lambda i: (0, 0)),
            pl.BlockSpec(w3.shape, lambda i: (0, 0)),
            pl.BlockSpec(b3.shape, lambda i: (0, 0)),
        ],
        out_specs=pl.BlockSpec((tm, npad), lambda i: (i, 0)),
        compiler_params=pltpu.CompilerParams(
            dimension_semantics=("parallel",),
            vmem_limit_bytes=_VMEM_LIMIT,
        ),
    )(x, w1, b1, w2, b2, w3, b3)

    return out[:m, :n_out]


# ---------------------------------------------------------------------------
# Parameters
# ---------------------------------------------------------------------------
def init_params(key):
    """PyTorch-layout parameters (Cout,Cin,kh,kw) / (out,in), uniform fan-in init."""
    ks = jax.random.split(key, 10)

    def u(k, shape, fan_in):
        bound = 1.0 / jnp.sqrt(jnp.float32(fan_in))
        return jax.random.uniform(k, shape, jnp.float32, -bound, bound)

    return {
        "conv1_w": u(ks[0], (6, 3, 5, 5), 3 * 25),
        "conv1_b": u(ks[1], (6,), 3 * 25),
        "conv2_w": u(ks[2], (16, 6, 5, 5), 6 * 25),
        "conv2_b": u(ks[3], (16,), 6 * 25),
        "fc1_w": u(ks[4], (120, 400), 400),
        "fc1_b": u(ks[5], (120,), 400),
        "fc2_w": u(ks[6], (84, 120), 120),
        "fc2_b": u(ks[7], (84,), 120),
        "fc3_w": u(ks[8], (10, 84), 84),
        "fc3_b": u(ks[9], (10,), 84),
    }


def prep_params(p):
    """One-time layout prep: transpose to (K, N), pad N (and K where fused) to 128."""

    def conv_prep(w, b):
        cout, cin, kh, kw = w.shape
        wk = jnp.transpose(w, (2, 3, 1, 0)).reshape(kh * kw * cin, cout)  # K-order (kh,kw,Cin)
        wk = jnp.pad(wk, ((0, 0), (0, LANES - cout)))
        bb = jnp.pad(b, (0, LANES - cout)).reshape(1, LANES)
        return wk, bb

    def fc_prep(w_on_ki, b, k_pad):
        nout, kin = w_on_ki.shape
        wk = jnp.pad(w_on_ki.T, ((0, k_pad - kin), (0, LANES - nout)))
        bb = jnp.pad(b, (0, LANES - nout)).reshape(1, LANES)
        return wk, bb

    c1w, c1b = conv_prep(p["conv1_w"], p["conv1_b"])
    c2w, c2b = conv_prep(p["conv2_w"], p["conv2_b"])

    # fc1 columns: PyTorch flattens NCHW as (C,H,W); our activation flattens as
    # (H,W,C), so permute fc1's input dimension once here.
    w1 = p["fc1_w"].reshape(120, 16, 5, 5).transpose(0, 2, 3, 1).reshape(120, 400)
    f1w, f1b = fc_prep(w1, p["fc1_b"], k_pad=400)
    f2w, f2b = fc_prep(p["fc2_w"], p["fc2_b"], k_pad=LANES)  # fc1 out padded to 128 (zeros)
    f3w, f3b = fc_prep(p["fc3_w"], p["fc3_b"], k_pad=LANES)  # fc2 out padded to 128 (zeros)

    return {
        "conv1_w": c1w, "conv1_b": c1b,
        "conv2_w": c2w, "conv2_b": c2b,
        "fc1_w": f1w, "fc1_b": f1b,
        "fc2_w": f2w, "fc2_b": f2b,
        "fc3_w": f3w, "fc3_b": f3b,
    }


# ---------------------------------------------------------------------------
# Model forward
# ---------------------------------------------------------------------------
@jax.jit
def forward(prepped, x_nchw):
    # Single layout change at entry; everything downstream is channels-last.
    x = jnp.transpose(x_nchw, (0, 2, 3, 1)).astype(jnp.float32)            # NHWC
    x = conv_relu_pool(x, prepped["conv1_w"], prepped["conv1_b"], cout=6)   # (N,14,14,6)
    x = conv_relu_pool(x, prepped["conv2_w"], prepped["conv2_b"], cout=16)  # (N,5,5,16)
    x = x.reshape(x.shape[0], -1)                                           # (N,400) (H,W,C) order
    return fc_fused(
        x,
        prepped["fc1_w"], prepped["fc1_b"],
        prepped["fc2_w"], prepped["fc2_b"],
        prepped["fc3_w"], prepped["fc3_b"],
        n_out=10,
    )                                                                       # (N,10)


if __name__ == "__main__":
    key = jax.random.PRNGKey(0)
    k_params, k_x = jax.random.split(key)
    params = init_params(k_params)
    prepped = prep_params(params)

    # Architecture requires 32x32 spatial input (-> 16*5*5 flatten); batch=2.
    x = jax.random.normal(k_x, (2, 3, 32, 32), dtype=jnp.float32)

    out = jax.block_until_ready(forward(prepped, x))
    assert out.shape == (2, 10), out.shape
    assert bool(jnp.all(jnp.isfinite(out)))
    print("KERNEL_OK")
</pallas_src>

<mosaic_0001>
module attributes {stable_mosaic.version = 11 : i64} {
  func.func @_conv_relu_pool_kernel(%arg0: i32, %arg1: memref<4x256x75xf32, #tpu.memory_space<vmem>>, %arg2: memref<75x128xf32, #tpu.memory_space<vmem>>, %arg3: memref<1x128xf32, #tpu.memory_space<vmem>>, %arg4: memref<256x128xf32, #tpu.memory_space<vmem>>) attributes {dimension_semantics = [#tpu.dimension_semantics<parallel>], iteration_bounds = array<i64: 2>, scalar_prefetch = 0 : i64, scratch_operands = 0 : i64, tpu.core_type = #tpu.core_type<tc>, window_params = [{transform_indices = @transform_0, window_bounds = array<i64: 4, 256, 75>}, {pipeline_mode = #tpu.pipeline_mode<synchronous>, transform_indices = @transform_1, window_bounds = array<i64: 75, 128>}, {pipeline_mode = #tpu.pipeline_mode<synchronous>, transform_indices = @transform_2, window_bounds = array<i64: 1, 128>}, {transform_indices = @transform_3, window_bounds = array<i64: 256, 128>}]} {
    %c0 = arith.constant 0 : index
    %c0_0 = arith.constant 0 : index
    %0 = vector.load %arg2[%c0, %c0_0] : memref<75x128xf32, #tpu.memory_space<vmem>>, vector<75x128xf32>
    %c0_1 = arith.constant 0 : index
    %c0_2 = arith.constant 0 : index
    %c0_3 = arith.constant 0 : index
    %1 = vector.load %arg1[%c0_1, %c0_2, %c0_3] : memref<4x256x75xf32, #tpu.memory_space<vmem>>, vector<1x256x75xf32>
    %2 = vector.shape_cast %1 : vector<1x256x75xf32> to vector<256x75xf32>
    %cst = arith.constant dense<0.000000e+00> : vector<256x128xf32>
    %3 = tpu.matmul %2, %0, %cst {dimension_numbers = #tpu.dot_dimension_numbers<[1], [0], [0], [1], [0, 0, 1, 1], [], []>} : vector<256x75xf32>, vector<75x128xf32>, vector<256x128xf32> -> vector<256x128xf32>
    %c1 = arith.constant 1 : index
    %c0_4 = arith.constant 0 : index
    %c0_5 = arith.constant 0 : index
    %4 = vector.load %arg1[%c1, %c0_4, %c0_5] : memref<4x256x75xf32, #tpu.memory_space<vmem>>, vector<1x256x75xf32>
    %5 = vector.shape_cast %4 : vector<1x256x75xf32> to vector<256x75xf32>
    %cst_6 = arith.constant dense<0.000000e+00> : vector<256x128xf32>
    %6 = tpu.matmul %5, %0, %cst_6 {dimension_numbers = #tpu.dot_dimension_numbers<[1], [0], [0], [1], [0, 0, 1, 1], [], []>} : vector<256x75xf32>, vector<75x128xf32>, vector<256x128xf32> -> vector<256x128xf32>
    %7 = arith.maximumf %3, %6 : vector<256x128xf32>
    %c2 = arith.constant 2 : index
    %c0_7 = arith.constant 0 : index
    %c0_8 = arith.constant 0 : index
    %8 = vector.load %arg1[%c2, %c0_7, %c0_8] : memref<4x256x75xf32, #tpu.memory_space<vmem>>, vector<1x256x75xf32>
    %9 = vector.shape_cast %8 : vector<1x256x75xf32> to vector<256x75xf32>
    %cst_9 = arith.constant dense<0.000000e+00> : vector<256x128xf32>
    %10 = tpu.matmul %9, %0, %cst_9 {dimension_numbers = #tpu.dot_dimension_numbers<[1], [0], [0], [1], [0, 0, 1, 1], [], []>} : vector<256x75xf32>, vector<75x128xf32>, vector<256x128xf32> -> vector<256x128xf32>
    %11 = arith.maximumf %7, %10 : vector<256x128xf32>
    %c3 = arith.constant 3 : index
    %c0_10 = arith.constant 0 : index
    %c0_11 = arith.constant 0 : index
    %12 = vector.load %arg1[%c3, %c0_10, %c0_11] : memref<4x256x75xf32, #tpu.memory_space<vmem>>, vector<1x256x75xf32>
    %13 = vector.shape_cast %12 : vector<1x256x75xf32> to vector<256x75xf32>
    %cst_12 = arith.constant dense<0.000000e+00> : vector<256x128xf32>
    %14 = tpu.matmul %13, %0, %cst_12 {dimension_numbers = #tpu.dot_dimension_numbers<[1], [0], [0], [1], [0, 0, 1, 1], [], []>} : vector<256x75xf32>, vector<75x128xf32>, vector<256x128xf32> -> vector<256x128xf32>
    %15 = arith.maximumf %11, %14 : vector<256x128xf32>
    %c0_13 = arith.constant 0 : index
    %c0_14 = arith.constant 0 : index
    %16 = vector.load %arg3[%c0_13, %c0_14] : memref<1x128xf32, #tpu.memory_space<vmem>>, vector<1x128xf32>
    %17 = vector.broadcast %16 : vector<1x128xf32> to vector<256x128xf32>
    %18 = arith.addf %15, %17 : vector<256x128xf32>
    %cst_15 = arith.constant 0.000000e+00 : f32
    %19 = vector.broadcast %cst_15 : f32 to vector<256x128xf32>
    %20 = arith.maximumf %18, %19 : vector<256x128xf32>
    %c0_16 = arith.constant 0 : index
    %c0_17 = arith.constant 0 : index
    %21 = vector.load %arg4[%c0_16, %c0_17] : memref<256x128xf32, #tpu.memory_space<vmem>>, vector<256x128xf32>
    tpu.vector_store %arg4[%c0_16, %c0_17], %20 {strides = array<i32>} : memref<256x128xf32, #tpu.memory_space<vmem>>, vector<256x128xf32>,
    return
  }
  func.func @transform_0(%arg0: i32) -> (i32, i32, i32) {
    %c0_i32 = arith.constant 0 : i32
    %c0_i32_0 = arith.constant 0 : i32
    %c0_i32_1 = arith.constant 0 : i32
    return %c0_i32, %arg0, %c0_i32_0 : i32, i32, i32
  }
  func.func @transform_1(%arg0: i32) -> (i32, i32) {
    %c0_i32 = arith.constant 0 : i32
    %c0_i32_0 = arith.constant 0 : i32
    %c0_i32_1 = arith.constant 0 : i32
    return %c0_i32, %c0_i32_0 : i32, i32
  }
  func.func @transform_2(%arg0: i32) -> (i32, i32) {
    %c0_i32 = arith.constant 0 : i32
    %c0_i32_0 = arith.constant 0 : i32
    %c0_i32_1 = arith.constant 0 : i32
    return %c0_i32, %c0_i32_0 : i32, i32
  }
  func.func @transform_3(%arg0: i32) -> (i32, i32) {
    %c0_i32 = arith.constant 0 : i32
    %c0_i32_0 = arith.constant 0 : i32
    return %arg0, %c0_i32 : i32, i32
  }
}

module attributes {stable_mosaic.version = 11 : i64} {
  func.func @_conv_relu_pool_kernel(%arg0: i32, %arg1: memref<4x56x150xf32, #tpu.memory_space<vmem>>, %arg2: memref<150x128xf32, #tpu.memory_space<vmem>>, %arg3: memref<1x128xf32, #tpu.memory_space<vmem>>, %arg4: memref<56x128xf32, #tpu.memory_space<vmem>>) attributes {dimension_semantics = [#tpu.dimension_semantics<parallel>], iteration_bounds = array<i64: 1>, scalar_prefetch = 0 : i64, scratch_operands = 0 : i64, tpu.core_type = #tpu.core_type<tc>, window_params = [{transform_indices = @transform_0, window_bounds = array<i64: 4, 56, 150>}, {pipeline_mode = #tpu.pipeline_mode<synchronous>, transform_indices = @transform_1, window_bounds = array<i64: 150, 128>}, {pipeline_mode = #tpu.pipeline_mode<synchronous>, transform_indices = @transform_2, window_bounds = array<i64: 1, 128>}, {transform_indices = @transform_3, window_bounds = array<i64: 56, 128>}]} {
    %c0 = arith.constant 0 : index
    %c0_0 = arith.constant 0 : index
    %0 = vector.load %arg2[%c0, %c0_0] : memref<150x128xf32, #tpu.memory_space<vmem>>, vector<150x128xf32>
    %c0_1 = arith.constant 0 : index
    %c0_2 = arith.constant 0 : index
    %c0_3 = arith.constant 0 : index
    %1 = vector.load %arg1[%c0_1, %c0_2, %c0_3] : memref<4x56x150xf32, #tpu.memory_space<vmem>>, vector<1x56x150xf32>
    %2 = vector.shape_cast %1 : vector<1x56x150xf32> to vector<56x150xf32>
    %cst = arith.constant dense<0.000000e+00> : vector<56x128xf32>
    %3 = tpu.matmul %2, %0, %cst {dimension_numbers = #tpu.dot_dimension_numbers<[1], [0], [0], [1], [0, 0, 1, 1], [], []>} : vector<56x150xf32>, vector<150x128xf32>, vector<56x128xf32> -> vector<56x128xf32>
    %c1 = arith.constant 1 : index
    %c0_4 = arith.constant 0 : index
    %c0_5 = arith.constant 0 : index
    %4 = vector.load %arg1[%c1, %c0_4, %c0_5] : memref<4x56x150xf32, #tpu.memory_space<vmem>>, vector<1x56x150xf32>
    %5 = vector.shape_cast %4 : vector<1x56x150xf32> to vector<56x150xf32>
    %cst_6 = arith.constant dense<0.000000e+00> : vector<56x128xf32>
    %6 = tpu.matmul %5, %0, %cst_6 {dimension_numbers = #tpu.dot_dimension_numbers<[1], [0], [0], [1], [0, 0, 1, 1], [], []>} : vector<56x150xf32>, vector<150x128xf32>, vector<56x128xf32> -> vector<56x128xf32>
    %7 = arith.maximumf %3, %6 : vector<56x128xf32>
    %c2 = arith.constant 2 : index
    %c0_7 = arith.constant 0 : index
    %c0_8 = arith.constant 0 : index
    %8 = vector.load %arg1[%c2, %c0_7, %c0_8] : memref<4x56x150xf32, #tpu.memory_space<vmem>>, vector<1x56x150xf32>
    %9 = vector.shape_cast %8 : vector<1x56x150xf32> to vector<56x150xf32>
    %cst_9 = arith.constant dense<0.000000e+00> : vector<56x128xf32>
    %10 = tpu.matmul %9, %0, %cst_9 {dimension_numbers = #tpu.dot_dimension_numbers<[1], [0], [0], [1], [0, 0, 1, 1], [], []>} : vector<56x150xf32>, vector<150x128xf32>, vector<56x128xf32> -> vector<56x128xf32>
    %11 = arith.maximumf %7, %10 : vector<56x128xf32>
    %c3 = arith.constant 3 : index
    %c0_10 = arith.constant 0 : index
    %c0_11 = arith.constant 0 : index
    %12 = vector.load %arg1[%c3, %c0_10, %c0_11] : memref<4x56x150xf32, #tpu.memory_space<vmem>>, vector<1x56x150xf32>
    %13 = vector.shape_cast %12 : vector<1x56x150xf32> to vector<56x150xf32>
    %cst_12 = arith.constant dense<0.000000e+00> : vector<56x128xf32>
    %14 = tpu.matmul %13, %0, %cst_12 {dimension_numbers = #tpu.dot_dimension_numbers<[1], [0], [0], [1], [0, 0, 1, 1], [], []>} : vector<56x150xf32>, vector<150x128xf32>, vector<56x128xf32> -> vector<56x128xf32>
    %15 = arith.maximumf %11, %14 : vector<56x128xf32>
    %c0_13 = arith.constant 0 : index
    %c0_14 = arith.constant 0 : index
    %16 = vector.load %arg3[%c0_13, %c0_14] : memref<1x128xf32, #tpu.memory_space<vmem>>, vector<1x128xf32>
    %17 = vector.broadcast %16 : vector<1x128xf32> to vector<56x128xf32>
    %18 = arith.addf %15, %17 : vector<56x128xf32>
    %cst_15 = arith.constant 0.000000e+00 : f32
    %19 = vector.broadcast %cst_15 : f32 to vector<56x128xf32>
    %20 = arith.maximumf %18, %19 : vector<56x128xf32>
    %c0_16 = arith.constant 0 : index
    %c0_17 = arith.constant 0 : index
    %21 = vector.load %arg4[%c0_16, %c0_17] : memref<56x128xf32, #tpu.memory_space<vmem>>, vector<56x128xf32>
    tpu.vector_store %arg4[%c0_16, %c0_17], %20 {strides = array<i32>} : memref<56x128xf32, #tpu.memory_space<vmem>>, vector<56x128xf32>,
    return
  }
  func.func @transform_0(%arg0: i32) -> (i32, i32, i32) {
    %c0_i32 = arith.constant 0 : i32
    %c0_i32_0 = arith.constant 0 : i32
    %c0_i32_1 = arith.constant 0 : i32
    return %c0_i32, %arg0, %c0_i32_0 : i32, i32, i32
  }
  func.func @transform_1(%arg0: i32) -> (i32, i32) {
    %c0_i32 = arith.constant 0 : i32
    %c0_i32_0 = arith.constant 0 : i32
    %c0_i32_1 = arith.constant 0 : i32
    return %c0_i32, %c0_i32_0 : i32, i32
  }
  func.func @transform_2(%arg0: i32) -> (i32, i32) {
    %c0_i32 = arith.constant 0 : i32
    %c0_i32_0 = arith.constant 0 : i32
    %c0_i32_1 = arith.constant 0 : i32
    return %c0_i32, %c0_i32_0 : i32, i32
  }
  func.func @transform_3(%arg0: i32) -> (i32, i32) {
    %c0_i32 = arith.constant 0 : i32
    %c0_i32_0 = arith.constant 0 : i32
    return %arg0, %c0_i32 : i32, i32
  }
}

module attributes {stable_mosaic.version = 11 : i64} {
  func.func @_fc_fused_kernel(%arg0: i32, %arg1: memref<8x400xf32, #tpu.memory_space<vmem>>, %arg2: memref<400x128xf32, #tpu.memory_space<vmem>>, %arg3: memref<1x128xf32, #tpu.memory_space<vmem>>, %arg4: memref<128x128xf32, #tpu.memory_space<vmem>>, %arg5: memref<1x128xf32, #tpu.memory_space<vmem>>, %arg6: memref<128x128xf32, #tpu.memory_space<vmem>>, %arg7: memref<1x128xf32, #tpu.memory_space<vmem>>, %arg8: memref<8x128xf32, #tpu.memory_space<vmem>>) attributes {dimension_semantics = [#tpu.dimension_semantics<parallel>], iteration_bounds = array<i64: 1>, scalar_prefetch = 0 : i64, scratch_operands = 0 : i64, tpu.core_type = #tpu.core_type<tc>, window_params = [{transform_indices = @transform_0, window_bounds = array<i64: 8, 400>}, {pipeline_mode = #tpu.pipeline_mode<synchronous>, transform_indices = @transform_1, window_bounds = array<i64: 400, 128>}, {pipeline_mode = #tpu.pipeline_mode<synchronous>, transform_indices = @transform_2, window_bounds = array<i64: 1, 128>}, {pipeline_mode = #tpu.pipeline_mode<synchronous>, transform_indices = @transform_3, window_bounds = array<i64: 128, 128>}, {pipeline_mode = #tpu.pipeline_mode<synchronous>, transform_indices = @transform_4, window_bounds = array<i64: 1, 128>}, {pipeline_mode = #tpu.pipeline_mode<synchronous>, transform_indices = @transform_5, window_bounds = array<i64: 128, 128>}, {pipeline_mode = #tpu.pipeline_mode<synchronous>, transform_indices = @transform_6, window_bounds = array<i64: 1, 128>}, {transform_indices = @transform_7, window_bounds = array<i64: 8, 128>}]} {
    %c0 = arith.constant 0 : index
    %c0_0 = arith.constant 0 : index
    %0 = vector.load %arg1[%c0, %c0_0] : memref<8x400xf32, #tpu.memory_space<vmem>>, vector<8x400xf32>
    %c0_1 = arith.constant 0 : index
    %c0_2 = arith.constant 0 : index
    %1 = vector.load %arg2[%c0_1, %c0_2] : memref<400x128xf32, #tpu.memory_space<vmem>>, vector<400x128xf32>
    %cst = arith.constant dense<0.000000e+00> : vector<8x128xf32>
    %2 = tpu.matmul %0, %1, %cst {dimension_numbers = #tpu.dot_dimension_numbers<[1], [0], [0], [1], [0, 0, 1, 1], [], []>} : vector<8x400xf32>, vector<400x128xf32>, vector<8x128xf32> -> vector<8x128xf32>
    %c0_3 = arith.constant 0 : index
    %c0_4 = arith.constant 0 : index
    %3 = vector.load %arg3[%c0_3, %c0_4] : memref<1x128xf32, #tpu.memory_space<vmem>>, vector<1x128xf32>
    %4 = vector.broadcast %3 : vector<1x128xf32> to vector<8x128xf32>
    %5 = arith.addf %2, %4 : vector<8x128xf32>
    %cst_5 = arith.constant 0.000000e+00 : f32
    %6 = vector.broadcast %cst_5 : f32 to vector<8x128xf32>
    %7 = arith.maximumf %5, %6 : vector<8x128xf32>
    %c0_6 = arith.constant 0 : index
    %c0_7 = arith.constant 0 : index
    %8 = vector.load %arg4[%c0_6, %c0_7] : memref<128x128xf32, #tpu.memory_space<vmem>>, vector<128x128xf32>
    %cst_8 = arith.constant dense<0.000000e+00> : vector<8x128xf32>
    %9 = tpu.matmul %7, %8, %cst_8 {dimension_numbers = #tpu.dot_dimension_numbers<[1], [0], [0], [1], [0, 0, 1, 1], [], []>} : vector<8x128xf32>, vector<128x128xf32>, vector<8x128xf32> -> vector<8x128xf32>
    %c0_9 = arith.constant 0 : index
    %c0_10 = arith.constant 0 : index
    %10 = vector.load %arg5[%c0_9, %c0_10] : memref<1x128xf32, #tpu.memory_space<vmem>>, vector<1x128xf32>
    %11 = vector.broadcast %10 : vector<1x128xf32> to vector<8x128xf32>
    %12 = arith.addf %9, %11 : vector<8x128xf32>
    %cst_11 = arith.constant 0.000000e+00 : f32
    %13 = vector.broadcast %cst_11 : f32 to vector<8x128xf32>
    %14 = arith.maximumf %12, %13 : vector<8x128xf32>
    %c0_12 = arith.constant 0 : index
    %c0_13 = arith.constant 0 : index
    %15 = vector.load %arg6[%c0_12, %c0_13] : memref<128x128xf32, #tpu.memory_space<vmem>>, vector<128x128xf32>
    %cst_14 = arith.constant dense<0.000000e+00> : vector<8x128xf32>
    %16 = tpu.matmul %14, %15, %cst_14 {dimension_numbers = #tpu.dot_dimension_numbers<[1], [0], [0], [1], [0, 0, 1, 1], [], []>} : vector<8x128xf32>, vector<128x128xf32>, vector<8x128xf32> -> vector<8x128xf32>
    %c0_15 = arith.constant 0 : index
    %c0_16 = arith.constant 0 : index
    %17 = vector.load %arg7[%c0_15, %c0_16] : memref<1x128xf32, #tpu.memory_space<vmem>>, vector<1x128xf32>
    %18 = vector.broadcast %17 : vector<1x128xf32> to vector<8x128xf32>
    %19 = arith.addf %16, %18 : vector<8x128xf32>
    %c0_17 = arith.constant 0 : index
    %c0_18 = arith.constant 0 : index
    %20 = vector.load %arg8[%c0_17, %c0_18] : memref<8x128xf32, #tpu.memory_space<vmem>>, vector<8x128xf32>
    tpu.vector_store %arg8[%c0_17, %c0_18], %19 {strides = array<i32>} : memref<8x128xf32, #tpu.memory_space<vmem>>, vector<8x128xf32>,
    return
  }
  func.func @transform_0(%arg0: i32) -> (i32, i32) {
    %c0_i32 = arith.constant 0 : i32
    %c0_i32_0 = arith.constant 0 : i32
    return %arg0, %c0_i32 : i32, i32
  }
  func.func @transform_1(%arg0: i32) -> (i32, i32) {
    %c0_i32 = arith.constant 0 : i32
    %c0_i32_0 = arith.constant 0 : i32
    %c0_i32_1 = arith.constant 0 : i32
    return %c0_i32, %c0_i32_0 : i32, i32
  }
  func.func @transform_2(%arg0: i32) -> (i32, i32) {
    %c0_i32 = arith.constant 0 : i32
    %c0_i32_0 = arith.constant 0 : i32
    %c0_i32_1 = arith.constant 0 : i32
    return %c0_i32, %c0_i32_0 : i32, i32
  }
  func.func @transform_3(%arg0: i32) -> (i32, i32) {
    %c0_i32 = arith.constant 0 : i32
    %c0_i32_0 = arith.constant 0 : i32
    %c0_i32_1 = arith.constant 0 : i32
    return %c0_i32, %c0_i32_0 : i32, i32
  }
  func.func @transform_4(%arg0: i32) -> (i32, i32) {
    %c0_i32 = arith.constant 0 : i32
    %c0_i32_0 = arith.constant 0 : i32
    %c0_i32_1 = arith.constant 0 : i32
    return %c0_i32, %c0_i32_0 : i32, i32
  }
  func.func @transform_5(%arg0: i32) -> (i32, i32) {
    %c0_i32 = arith.constant 0 : i32
    %c0_i32_0 = arith.constant 0 : i32
    %c0_i32_1 = arith.constant 0 : i32
    return %c0_i32, %c0_i32_0 : i32, i32
  }
  func.func @transform_6(%arg0: i32) -> (i32, i32) {
    %c0_i32 = arith.constant 0 : i32
    %c0_i32_0 = arith.constant 0 : i32
    %c0_i32_1 = arith.constant 0 : i32
    return %c0_i32, %c0_i32_0 : i32, i32
  }
  func.func @transform_7(%arg0: i32) -> (i32, i32) {
    %c0_i32 = arith.constant 0 : i32
    %c0_i32_0 = arith.constant 0 : i32
    return %arg0, %c0_i32 : i32, i32
  }
}

</mosaic_0001>

<bundles_post_ra>
// kernel: forward.3
= control target key start
LH: loop header
LB: loop body
LE: loop exit
PB: predicated region body
PF: predicated region fallthrough
CT: control target
= control target key end

     0   :  { %s3159_s12 = smov 0   ;;  %s3161_s13 = smov 0   ;;  %s4130_s0 = inlined_call_operand.vmem [shape: f32[4,512,75], index: 0, kind: input, shape index: {}]   ;;  %s4131_s1 = inlined_call_operand.vmem [shape: f32[75,128], index: 1, kind: input, shape index: {}]   ;;  %s4132_s2 = inlined_call_operand.vmem [shape: f32[1,128], index: 2, kind: input, shape index: {}]   ;;  %s4133_s3 = inlined_call_operand.vmem [shape: f32[512,128], index: 3, kind: output, shape index: {}]  }
   0x1   :  { %s3163_s14 = smov 0  }
   0x2 LB: > { %s2408_s15 = sadd.s32 4294967295, %s3137_s14   ;;  %s3176_s16 = sadd.s32 1, %s3137_s14   ;;  %s3137_s14 = sphi %s3163_s14, %s4160_s14   ;;  %s3133_s13 = sphi %s3161_s13, %s4159_s13   ;;  %s3129_s12 = sphi %s3159_s12, %s4158_s12  }
   0x3   : > { %s17_s17 = ssub.s32 %s3137_s14, %s3176_s16  ;;  %s20_s18 = sadd.s32 1, %s3133_s13 }
   0x4   : > { %p18_p0 = scmp.eq.s32.totalorder %s17_s17, 0  ;;  %p27_p1 = scmp.ne.s32.totalorder %s3133_s13, %s3129_s12 }
   0x5   : > { %p28_p2 = scmp.eq.s32.totalorder %s3137_s14, 0  ;;  %p2411_p4 = scmp.ge.s32.totalorder %s3137_s14, 2 }
   0x6   : > { %s3185_s19 = scalar_select %p18_p0, %s3133_s13, %s20_s18  }
   0x7   : > { %p29_p3 = por %p28_p2, %p27_p1  ;;  %127 = sbr.rel (%p2411_p4) target bundleno = 80 (0x50), region = 24 }
   0xc   : > { %130 = sbr.rel (!%p29_p3) target bundleno = 80 (0x50), region = 28  ;;  %s132_s20 = sand.u32 (%p29_p3), 1, %s3133_s13  }
   0xd   : > { %s2650_s21 = sshll.u32 (%p29_p3), %s3137_s14, 8  ;;  %s2412_s22 = sshll.u32 (%p29_p3), %s132_s20, 10 }
   0xe   : > { %s3193_s25 = scalar_lea.vmem (%p29_p3), %s4130_s0, %s2650_s21  ;;  %s3198_s26 = scalar_lea.vmem (%p29_p3), [#allocation2], %s2412_s22 }
   0xf   : > { %v420_v0 = vld [vmem:[%s3193_s25] sm:$0xff] (%p29_p3)  ;;  %v422_v1 = vld [vmem:[%s3193_s25 + $0x8] sm:$0xff] (%p29_p3)  ;;  %v424_v2 = vld [vmem:[%s3193_s25 + $0x10] sm:$0xff] (%p29_p3) }
  0x10   : > { %421 = vst [vmem:[%s3198_s26] sm:$0xff] (%p29_p3), %v420_v0  ;;  %423 = vst [vmem:[%s3198_s26 + $0x8] sm:$0xff] (%p29_p3), %v422_v1  ;;  %v426_v3 = vld [vmem:[%s3193_s25 + $0x18] sm:$0xff] (%p29_p3)  ;;  %v428_v4 = vld [vmem:[%s3193_s25 + $0x20] sm:$0xff] (%p29_p3) }
  0x11   : > { %425 = vst [vmem:[%s3198_s26 + $0x10] sm:$0xff] %v424_v2  ;;  %v430_v5 = vld [vmem:[%s3193_s25 + $0x28] sm:$0xff]  ;;  %427 = vst [vmem:[%s3198_s26 + $0x18] sm:$0xff] %v426_v3  ;;  %v432_v6 = vld [vmem:[%s3193_s25 + $0x30] sm:$0xff] }
  0x12   : > { %429 = vst [vmem:[%s3198_s26 + $0x20] sm:$0xff] %v428_v4  ;;  %431 = vst [vmem:[%s3198_s26 + $0x28] sm:$0xff] %v430_v5  ;;  %v434_v7 = vld [vmem:[%s3193_s25 + $0x38] sm:$0xff]  ;;  %v436_v8 = vld [vmem:[%s3193_s25 + $0x40] sm:$0xff] }
  0x13   : > { %433 = vst [vmem:[%s3198_s26 + $0x30] sm:$0xff] %v432_v6  ;;  %435 = vst [vmem:[%s3198_s26 + $0x38] sm:$0xff] %v434_v7  ;;  %v438_v9 = vld [vmem:[%s3193_s25 + $0x48] sm:$0xff]  ;;  %v440_v10 = vld [vmem:[%s3193_s25 + $0x50] sm:$0xff] }
  0x14   : > { %437 = vst [vmem:[%s3198_s26 + $0x40] sm:$0xff] %v436_v8  ;;  %v442_v11 = vld [vmem:[%s3193_s25 + $0x58] sm:$0xff]  ;;  %439 = vst [vmem:[%s3198_s26 + $0x48] sm:$0xff] %v438_v9  ;;  %v444_v12 = vld [vmem:[%s3193_s25 + $0x60] sm:$0xff] }
  0x15   : > { %441 = vst [vmem:[%s3198_s26 + $0x50] sm:$0xff] %v440_v10  ;;  %443 = vst [vmem:[%s3198_s26 + $0x58] sm:$0xff] %v442_v11  ;;  %v446_v13 = vld [vmem:[%s3193_s25 + $0x68] sm:$0xff]  ;;  %v448_v14 = vld [vmem:[%s3193_s25 + $0x70] sm:$0xff] }
  0x16   : > { %445 = vst [vmem:[%s3198_s26 + $0x60] sm:$0xff] %v444_v12  ;;  %447 = vst [vmem:[%s3198_s26 + $0x68] sm:$0xff] %v446_v13  ;;  %v450_v15 = vld [vmem:[%s3193_s25 + $0x78] sm:$0xff]  ;;  %v452_v16 = vld [vmem:[%s3193_s25 + $0x80] sm:$0xff] }
  0x17   : > { %449 = vst [vmem:[%s3198_s26 + $0x70] sm:$0xff] %v448_v14  ;;  %v454_v17 = vld [vmem:[%s3193_s25 + $0x88] sm:$0xff]  ;;  %451 = vst [vmem:[%s3198_s26 + $0x78] sm:$0xff] %v450_v15  ;;  %v456_v18 = vld [vmem:[%s3193_s25 + $0x90] sm:$0xff] }
  0x18   : > { %453 = vst [vmem:[%s3198_s26 + $0x80] sm:$0xff] %v452_v16  ;;  %455 = vst [vmem:[%s3198_s26 + $0x88] sm:$0xff] %v454_v17  ;;  %v458_v19 = vld [vmem:[%s3193_s25 + $0x98] sm:$0xff]  ;;  %v460_v20 = vld [vmem:[%s3193_s25 + $0xa0] sm:$0xff] }
  0x19   : > { %457 = vst [vmem:[%s3198_s26 + $0x90] sm:$0xff] %v456_v18  ;;  %459 = vst [vmem:[%s3198_s26 + $0x98] sm:$0xff] %v458_v19  ;;  %v462_v21 = vld [vmem:[%s3193_s25 + $0xa8] sm:$0xff]  ;;  %v464_v22 = vld [vmem:[%s3193_s25 + $0xb0] sm:$0xff] }
  0x1a   : > { %461 = vst [vmem:[%s3198_s26 + $0xa0] sm:$0xff] %v460_v20  ;;  %v466_v23 = vld [vmem:[%s3193_s25 + $0xb8] sm:$0xff]  ;;  %463 = vst [vmem:[%s3198_s26 + $0xa8] sm:$0xff] %v462_v21  ;;  %v468_v24 = vld [vmem:[%s3193_s25 + $0xc0] sm:$0xff] }
  0x1b   : > { %465 = vst [vmem:[%s3198_s26 + $0xb0] sm:$0xff] %v464_v22  ;;  %467 = vst [vmem:[%s3198_s26 + $0xb8] sm:$0xff] %v466_v23  ;;  %v470_v25 = vld [vmem:[%s3193_s25 + $0xc8] sm:$0xff]  ;;  %v472_v26 = vld [vmem:[%s3193_s25 + $0xd0] sm:$0xff] }
  0x1c   : > { %469 = vst [vmem:[%s3198_s26 + $0xc0] sm:$0xff] %v468_v24  ;;  %471 = vst [vmem:[%s3198_s26 + $0xc8] sm:$0xff] %v470_v25  ;;  %v474_v27 = vld [vmem:[%s3193_s25 + $0xd8] sm:$0xff]  ;;  %v476_v28 = vld [vmem:[%s3193_s25 + $0xe0] sm:$0xff] }
  0x1d   : > { %473 = vst [vmem:[%s3198_s26 + $0xd0] sm:$0xff] %v472_v26  ;;  %v478_v29 = vld [vmem:[%s3193_s25 + $0xe8] sm:$0xff]  ;;  %475 = vst [vmem:[%s3198_s26 + $0xd8] sm:$0xff] %v474_v27  ;;  %v480_v30 = vld [vmem:[%s3193_s25 + $0xf0] sm:$0xff] }
  0x1e   : > { %477 = vst [vmem:[%s3198_s26 + $0xe0] sm:$0xff] %v476_v28  ;;  %479 = vst [vmem:[%s3198_s26 + $0xe8] sm:$0xff] %v478_v29  ;;  %v482_v31 = vld [vmem:[%s3193_s25 + $0xf8] sm:$0xff]  ;;  %v484_v32 = vld [vmem:[%s3193_s25 + $0x200] sm:$0xff] }
  0x1f   : > { %481 = vst [vmem:[%s3198_s26 + $0xf0] sm:$0xff] %v480_v30  ;;  %483 = vst [vmem:[%s3198_s26 + $0xf8] sm:$0xff] %v482_v31  ;;  %v486_v33 = vld [vmem:[%s3193_s25 + $0x208] sm:$0xff]  ;;  %v488_v34 = vld [vmem:[%s3193_s25 + $0x210] sm:$0xff] }
  0x20   : > { %485 = vst [vmem:[%s3198_s26 + $0x100] sm:$0xff] %v484_v32  ;;  %v490_v35 = vld [vmem:[%s3193_s25 + $0x218] sm:$0xff]  ;;  %487 = vst [vmem:[%s3198_s26 + $0x108] sm:$0xff] %v486_v33  ;;  %v492_v36 = vld [vmem:[%s3193_s25 + $0x220] sm:$0xff] }
  0x21   : > { %489 = vst [vmem:[%s3198_s26 + $0x110] sm:$0xff] %v488_v34  ;;  %491 = vst [vmem:[%s3198_s26 + $0x118] sm:$0xff] %v490_v35  ;;  %v494_v37 = vld [vmem:[%s3193_s25 + $0x228] sm:$0xff]  ;;  %v496_v38 = vld [vmem:[%s3193_s25 + $0x230] sm:$0xff] }
  0x22   : > { %493 = vst [vmem:[%s3198_s26 + $0x120] sm:$0xff] %v492_v36  ;;  %495 = vst [vmem:[%s3198_s26 + $0x128] sm:$0xff] %v494_v37  ;;  %v498_v39 = vld [vmem:[%s3193_s25 + $0x238] sm:$0xff]  ;;  %v500_v40 = vld [vmem:[%s3193_s25 + $0x240] sm:$0xff] }
  0x23   : > { %497 = vst [vmem:[%s3198_s26 + $0x130] sm:$0xff] %v496_v38  ;;  %v502_v41 = vld [vmem:[%s3193_s25 + $0x248] sm:$0xff]  ;;  %499 = vst [vmem:[%s3198_s26 + $0x138] sm:$0xff] %v498_v39  ;;  %v504_v42 = vld [vmem:[%s3193_s25 + $0x250] sm:$0xff] }
  0x24   : > { %501 = vst [vmem:[%s3198_s26 + $0x140] sm:$0xff] %v500_v40  ;;  %503 = vst [vmem:[%s3198_s26 + $0x148] sm:$0xff] %v502_v41  ;;  %v506_v43 = vld [vmem:[%s3193_s25 + $0x258] sm:$0xff]  ;;  %v508_v44 = vld [vmem:[%s3193_s25 + $0x260] sm:$0xff] }
  0x25   : > { %505 = vst [vmem:[%s3198_s26 + $0x150] sm:$0xff] %v504_v42  ;;  %507 = vst [vmem:[%s3198_s26 + $0x158] sm:$0xff] %v506_v43  ;;  %v510_v45 = vld [vmem:[%s3193_s25 + $0x268] sm:$0xff]  ;;  %v512_v46 = vld [vmem:[%s3193_s25 + $0x270] sm:$0xff] }
  0x26   : > { %509 = vst [vmem:[%s3198_s26 + $0x160] sm:$0xff] %v508_v44  ;;  %v514_v47 = vld [vmem:[%s3193_s25 + $0x278] sm:$0xff]  ;;  %511 = vst [vmem:[%s3198_s26 + $0x168] sm:$0xff] %v510_v45  ;;  %v516_v48 = vld [vmem:[%s3193_s25 + $0x280] sm:$0xff] }
  0x27   : > { %513 = vst [vmem:[%s3198_s26 + $0x170] sm:$0xff] %v512_v46  ;;  %515 = vst [vmem:[%s3198_s26 + $0x178] sm:$0xff] %v514_v47  ;;  %v518_v49 = vld [vmem:[%s3193_s25 + $0x288] sm:$0xff]  ;;  %v520_v50 = vld [vmem:[%s3193_s25 + $0x290] sm:$0xff] }
  0x28   : > { %517 = vst [vmem:[%s3198_s26 + $0x180] sm:$0xff] %v516_v48  ;;  %519 = vst [vmem:[%s3198_s26 + $0x188] sm:$0xff] %v518_v49  ;;  %v522_v51 = vld [vmem:[%s3193_s25 + $0x298] sm:$0xff]  ;;  %v524_v52 = vld [vmem:[%s3193_s25 + $0x2a0] sm:$0xff] }
  0x29   : > { %521 = vst [vmem:[%s3198_s26 + $0x190] sm:$0xff] %v520_v50  ;;  %v526_v53 = vld [vmem:[%s3193_s25 + $0x2a8] sm:$0xff]  ;;  %523 = vst [vmem:[%s3198_s26 + $0x198] sm:$0xff] %v522_v51  ;;  %v528_v54 = vld [vmem:[%s3193_s25 + $0x2b0] sm:$0xff] }
  0x2a   : > { %525 = vst [vmem:[%s3198_s26 + $0x1a0] sm:$0xff] %v524_v52  ;;  %527 = vst [vmem:[%s3198_s26 + $0x1a8] sm:$0xff] %v526_v53  ;;  %v530_v55 = vld [vmem:[%s3193_s25 + $0x2b8] sm:$0xff]  ;;  %v532_v56 = vld [vmem:[%s3193_s25 + $0x2c0] sm:$0xff] }
  0x2b   : > { %529 = vst [vmem:[%s3198_s26 + $0x1b0] sm:$0xff] %v528_v54  ;;  %531 = vst [vmem:[%s3198_s26 + $0x1b8] sm:$0xff] %v530_v55  ;;  %v534_v57 = vld [vmem:[%s3193_s25 + $0x2c8] sm:$0xff]  ;;  %v536_v58 = vld [vmem:[%s3193_s25 + $0x2d0] sm:$0xff] }
  0x2c   : > { %533 = vst [vmem:[%s3198_s26 + $0x1c0] sm:$0xff] %v532_v56  ;;  %v538_v59 = vld [vmem:[%s3193_s25 + $0x2d8] sm:$0xff]  ;;  %535 = vst [vmem:[%s3198_s26 + $0x1c8] sm:$0xff] %v534_v57  ;;  %v540_v60 = vld [vmem:[%s3193_s25 + $0x2e0] sm:$0xff] }
  0x2d   : > { %537 = vst [vmem:[%s3198_s26 + $0x1d0] sm:$0xff] %v536_v58  ;;  %539 = vst [vmem:[%s3198_s26 + $0x1d8] sm:$0xff] %v538_v59  ;;  %v542_v61 = vld [vmem:[%s3193_s25 + $0x2e8] sm:$0xff]  ;;  %v544_v62 = vld [vmem:[%s3193_s25 + $0x2f0] sm:$0xff] }
  0x2e   : > { %541 = vst [vmem:[%s3198_s26 + $0x1e0] sm:$0xff] %v540_v60  ;;  %543 = vst [vmem:[%s3198_s26 + $0x1e8] sm:$0xff] %v542_v61  ;;  %v546_v63 = vld [vmem:[%s3193_s25 + $0x2f8] sm:$0xff]  ;;  %v548_v0 = vld [vmem:[%s3193_s25 + $0x400] sm:$0xff] }
  0x2f   : > { %545 = vst [vmem:[%s3198_s26 + $0x1f0] sm:$0xff] %v544_v62  ;;  %v550_v1 = vld [vmem:[%s3193_s25 + $0x408] sm:$0xff]  ;;  %547 = vst [vmem:[%s3198_s26 + $0x1f8] sm:$0xff] %v546_v63  ;;  %v552_v2 = vld [vmem:[%s3193_s25 + $0x410] sm:$0xff] }
  0x30   : > { %549 = vst [vmem:[%s3198_s26 + $0x200] sm:$0xff] %v548_v0  ;;  %551 = vst [vmem:[%s3198_s26 + $0x208] sm:$0xff] %v550_v1  ;;  %v554_v3 = vld [vmem:[%s3193_s25 + $0x418] sm:$0xff]  ;;  %v556_v4 = vld [vmem:[%s3193_s25 + $0x420] sm:$0xff] }
  0x31   : > { %553 = vst [vmem:[%s3198_s26 + $0x210] sm:$0xff] %v552_v2  ;;  %555 = vst [vmem:[%s3198_s26 + $0x218] sm:$0xff] %v554_v3  ;;  %v558_v5 = vld [vmem:[%s3193_s25 + $0x428] sm:$0xff]  ;;  %v560_v6 = vld [vmem:[%s3193_s25 + $0x430] sm:$0xff] }
  0x32   : > { %557 = vst [vmem:[%s3198_s26 + $0x220] sm:$0xff] %v556_v4  ;;  %v562_v7 = vld [vmem:[%s3193_s25 + $0x438] sm:$0xff]  ;;  %559 = vst [vmem:[%s3198_s26 + $0x228] sm:$0xff] %v558_v5  ;;  %v564_v8 = vld [vmem:[%s3193_s25 + $0x440] sm:$0xff] }
  0x33   : > { %561 = vst [vmem:[%s3198_s26 + $0x230] sm:$0xff] %v560_v6  ;;  %563 = vst [vmem:[%s3198_s26 + $0x238] sm:$0xff] %v562_v7  ;;  %v566_v9 = vld [vmem:[%s3193_s25 + $0x448] sm:$0xff]  ;;  %v568_v10 = vld [vmem:[%s3193_s25 + $0x450] sm:$0xff] }
  0x34   : > { %565 = vst [vmem:[%s3198_s26 + $0x240] sm:$0xff] %v564_v8  ;;  %567 = vst [vmem:[%s3198_s26 + $0x248] sm:$0xff] %v566_v9  ;;  %v570_v11 = vld [vmem:[%s3193_s25 + $0x458] sm:$0xff]  ;;  %v572_v12 = vld [vmem:[%s3193_s25 + $0x460] sm:$0xff] }
  0x35   : > { %569 = vst [vmem:[%s3198_s26 + $0x250] sm:$0xff] %v568_v10  ;;  %v574_v13 = vld [vmem:[%s3193_s25 + $0x468] sm:$0xff]  ;;  %571 = vst [vmem:[%s3198_s26 + $0x258] sm:$0xff] %v570_v11  ;;  %v576_v14 = vld [vmem:[%s3193_s25 + $0x470] sm:$0xff] }
  0x36   : > { %573 = vst [vmem:[%s3198_s26 + $0x260] sm:$0xff] %v572_v12  ;;  %575 = vst [vmem:[%s3198_s26 + $0x268] sm:$0xff] %v574_v13  ;;  %v578_v15 = vld [vmem:[%s3193_s25 + $0x478] sm:$0xff]  ;;  %v580_v16 = vld [vmem:[%s3193_s25 + $0x480] sm:$0xff] }
  0x37   : > { %577 = vst [vmem:[%s3198_s26 + $0x270] sm:$0xff] %v576_v14  ;;  %579 = vst [vmem:[%s3198_s26 + $0x278] sm:$0xff] %v578_v15  ;;  %v582_v17 = vld [vmem:[%s3193_s25 + $0x488] sm:$0xff]  ;;  %v584_v18 = vld [vmem:[%s3193_s25 + $0x490] sm:$0xff] }
  0x38   : > { %581 = vst [vmem:[%s3198_s26 + $0x280] sm:$0xff] %v580_v16  ;;  %v586_v19 = vld [vmem:[%s3193_s25 + $0x498] sm:$0xff]  ;;  %583 = vst [vmem:[%s3198_s26 + $0x288] sm:$0xff] %v582_v17  ;;  %v588_v20 = vld [vmem:[%s3193_s25 + $0x4a0] sm:$0xff] }
  0x39   : > { %585 = vst [vmem:[%s3198_s26 + $0x290] sm:$0xff] %v584_v18  ;;  %587 = vst [vmem:[%s3198_s26 + $0x298] sm:$0xff] %v586_v19  ;;  %v590_v21 = vld [vmem:[%s3193_s25 + $0x4a8] sm:$0xff]  ;;  %v592_v22 = vld [vmem:[%s3193_s25 + $0x4b0] sm:$0xff] }
  0x3a   : > { %589 = vst [vmem:[%s3198_s26 + $0x2a0] sm:$0xff] %v588_v20  ;;  %591 = vst [vmem:[%s3198_s26 + $0x2a8] sm:$0xff] %v590_v21  ;;  %v594_v23 = vld [vmem:[%s3193_s25 + $0x4b8] sm:$0xff]  ;;  %v596_v24 = vld [vmem:[%s3193_s25 + $0x4c0] sm:$0xff] }
  0x3b   : > { %593 = vst [vmem:[%s3198_s26 + $0x2b0] sm:$0xff] %v592_v22  ;;  %v598_v25 = vld [vmem:[%s3193_s25 + $0x4c8] sm:$0xff]  ;;  %595 = vst [vmem:[%s3198_s26 + $0x2b8] sm:$0xff] %v594_v23  ;;  %v600_v26 = vld [vmem:[%s3193_s25 + $0x4d0] sm:$0xff] }
  0x3c   : > { %597 = vst [vmem:[%s3198_s26 + $0x2c0] sm:$0xff] %v596_v24  ;;  %599 = vst [vmem:[%s3198_s26 + $0x2c8] sm:$0xff] %v598_v25  ;;  %v602_v27 = vld [vmem:[%s3193_s25 + $0x4d8] sm:$0xff]  ;;  %v604_v28 = vld [vmem:[%s3193_s25 + $0x4e0] sm:$0xff] }
  0x3d   : > { %601 = vst [vmem:[%s3198_s26 + $0x2d0] sm:$0xff] %v600_v26  ;;  %603 = vst [vmem:[%s3198_s26 + $0x2d8] sm:$0xff] %v602_v27  ;;  %v606_v29 = vld [vmem:[%s3193_s25 + $0x4e8] sm:$0xff]  ;;  %v608_v30 = vld [vmem:[%s3193_s25 + $0x4f0] sm:$0xff] }
  0x3e   : > { %605 = vst [vmem:[%s3198_s26 + $0x2e0] sm:$0xff] %v604_v28  ;;  %v610_v31 = vld [vmem:[%s3193_s25 + $0x4f8] sm:$0xff]  ;;  %607 = vst [vmem:[%s3198_s26 + $0x2e8] sm:$0xff] %v606_v29  ;;  %v612_v32 = vld [vmem:[%s3193_s25 + $0x600] sm:$0xff] }
  0x3f   : > { %609 = vst [vmem:[%s3198_s26 + $0x2f0] sm:$0xff] %v608_v30  ;;  %611 = vst [vmem:[%s3198_s26 + $0x2f8] sm:$0xff] %v610_v31  ;;  %v614_v33 = vld [vmem:[%s3193_s25 + $0x608] sm:$0xff]  ;;  %v616_v34 = vld [vmem:[%s3193_s25 + $0x610] sm:$0xff] }
  0x40   : > { %613 = vst [vmem:[%s3198_s26 + $0x300] sm:$0xff] %v612_v32  ;;  %615 = vst [vmem:[%s3198_s26 + $0x308] sm:$0xff] %v614_v33  ;;  %v618_v35 = vld [vmem:[%s3193_s25 + $0x618] sm:$0xff]  ;;  %v620_v36 = vld [vmem:[%s3193_s25 + $0x620] sm:$0xff] }
  0x41   : > { %617 = vst [vmem:[%s3198_s26 + $0x310] sm:$0xff] %v616_v34  ;;  %v622_v37 = vld [vmem:[%s3193_s25 + $0x628] sm:$0xff]  ;;  %619 = vst [vmem:[%s3198_s26 + $0x318] sm:$0xff] %v618_v35  ;;  %v624_v38 = vld [vmem:[%s3193_s25 + $0x630] sm:$0xff] }
  0x42   : > { %621 = vst [vmem:[%s3198_s26 + $0x320] sm:$0xff] %v620_v36  ;;  %623 = vst [vmem:[%s3198_s26 + $0x328] sm:$0xff] %v622_v37  ;;  %v626_v39 = vld [vmem:[%s3193_s25 + $0x638] sm:$0xff]  ;;  %v628_v40 = vld [vmem:[%s3193_s25 + $0x640] sm:$0xff] }
  0x43   : > { %625 = vst [vmem:[%s3198_s26 + $0x330] sm:$0xff] %v624_v38  ;;  %627 = vst [vmem:[%s3198_s26 + $0x338] sm:$0xff] %v626_v39  ;;  %v630_v41 = vld [vmem:[%s3193_s25 + $0x648] sm:$0xff]  ;;  %v632_v42 = vld [vmem:[%s3193_s25 + $0x650] sm:$0xff] }
  0x44   : > { %629 = vst [vmem:[%s3198_s26 + $0x340] sm:$0xff] %v628_v40  ;;  %v634_v43 = vld [vmem:[%s3193_s25 + $0x658] sm:$0xff]  ;;  %631 = vst [vmem:[%s3198_s26 + $0x348] sm:$0xff] %v630_v41  ;;  %v636_v44 = vld [vmem:[%s3193_s25 + $0x660] sm:$0xff] }
  0x45   : > { %633 = vst [vmem:[%s3198_s26 + $0x350] sm:$0xff] %v632_v42  ;;  %635 = vst [vmem:[%s3198_s26 + $0x358] sm:$0xff] %v634_v43  ;;  %v638_v45 = vld [vmem:[%s3193_s25 + $0x668] sm:$0xff]  ;;  %v640_v46 = vld [vmem:[%s3193_s25 + $0x670] sm:$0xff] }
  0x46   : > { %637 = vst [vmem:[%s3198_s26 + $0x360] sm:$0xff] %v636_v44  ;;  %639 = vst [vmem:[%s3198_s26 + $0x368] sm:$0xff] %v638_v45  ;;  %v642_v47 = vld [vmem:[%s3193_s25 + $0x678] sm:$0xff]  ;;  %v644_v48 = vld [vmem:[%s3193_s25 + $0x680] sm:$0xff] }
  0x47   : > { %641 = vst [vmem:[%s3198_s26 + $0x370] sm:$0xff] %v640_v46  ;;  %v646_v49 = vld [vmem:[%s3193_s25 + $0x688] sm:$0xff]  ;;  %643 = vst [vmem:[%s3198_s26 + $0x378] sm:$0xff] %v642_v47  ;;  %v648_v50 = vld [vmem:[%s3193_s25 + $0x690] sm:$0xff] }
  0x48   : > { %645 = vst [vmem:[%s3198_s26 + $0x380] sm:$0xff] %v644_v48  ;;  %647 = vst [vmem:[%s3198_s26 + $0x388] sm:$0xff] %v646_v49  ;;  %v650_v51 = vld [vmem:[%s3193_s25 + $0x698] sm:$0xff]  ;;  %v652_v52 = vld [vmem:[%s3193_s25 + $0x6a0] sm:$0xff] }
  0x49   : > { %649 = vst [vmem:[%s3198_s26 + $0x390] sm:$0xff] %v648_v50  ;;  %651 = vst [vmem:[%s3198_s26 + $0x398] sm:$0xff] %v650_v51  ;;  %v654_v53 = vld [vmem:[%s3193_s25 + $0x6a8] sm:$0xff]  ;;  %v656_v54 = vld [vmem:[%s3193_s25 + $0x6b0] sm:$0xff] }
  0x4a   : > { %653 = vst [vmem:[%s3198_s26 + $0x3a0] sm:$0xff] %v652_v52  ;;  %v658_v55 = vld [vmem:[%s3193_s25 + $0x6b8] sm:$0xff]  ;;  %655 = vst [vmem:[%s3198_s26 + $0x3a8] sm:$0xff] %v654_v53  ;;  %v660_v56 = vld [vmem:[%s3193_s25 + $0x6c0] sm:$0xff] }
  0x4b   : > { %657 = vst [vmem:[%s3198_s26 + $0x3b0] sm:$0xff] %v656_v54  ;;  %659 = vst [vmem:[%s3198_s26 + $0x3b8] sm:$0xff] %v658_v55  ;;  %v662_v57 = vld [vmem:[%s3193_s25 + $0x6c8] sm:$0xff]  ;;  %v664_v58 = vld [vmem:[%s3193_s25 + $0x6d0] sm:$0xff] }
  0x4c   : > { %661 = vst [vmem:[%s3198_s26 + $0x3c0] sm:$0xff] %v660_v56  ;;  %663 = vst [vmem:[%s3198_s26 + $0x3c8] sm:$0xff] %v662_v57  ;;  %v666_v59 = vld [vmem:[%s3193_s25 + $0x6d8] sm:$0xff]  ;;  %v668_v60 = vld [vmem:[%s3193_s25 + $0x6e0] sm:$0xff] }
  0x4d   : > { %665 = vst [vmem:[%s3198_s26 + $0x3d0] sm:$0xff] %v664_v58  ;;  %v670_v61 = vld [vmem:[%s3193_s25 + $0x6e8] sm:$0xff]  ;;  %667 = vst [vmem:[%s3198_s26 + $0x3d8] sm:$0xff] %v666_v59  ;;  %v672_v62 = vld [vmem:[%s3193_s25 + $0x6f0] sm:$0xff] }
  0x4e   : > { %669 = vst [vmem:[%s3198_s26 + $0x3e0] sm:$0xff] %v668_v60  ;;  %671 = vst [vmem:[%s3198_s26 + $0x3e8] sm:$0xff] %v670_v61  ;;  %v674_v63 = vld [vmem:[%s3193_s25 + $0x6f8] sm:$0xff] }
  0x4f   : > { %673 = vst [vmem:[%s3198_s26 + $0x3f0] sm:$0xff] %v672_v62  ;;  %675 = vst [vmem:[%s3198_s26 + $0x3f8] sm:$0xff] %v674_v63 }
  0x50 PF: > { %p2415_p5 = scmp.ge.s32.totalorder %s3137_s14, 1  ;;  %p680_p6 = scmp.lt.s32.totalorder %s3137_s14, 3 }
  0x52   : > { %p681_p7 = pnand %p2415_p5, %p680_p6 }
  0x54   : > { %684 = sbr.rel (%p681_p7) target bundleno = 439 (0x1b7), region = 66 }
  0x59   : > { %v3458_v0 = vld [vmem:[%s4131_s1 + $0x48] sm:$0x7]  ;;  %vm856_vm0 = vcmask 1042432   ;;  %v3463_v1 = vld [vmem:[%s4131_s1 + $0x40] sm:$0xff]  ;;  %v3476_v2 = vld [vmem:[%s4131_s1 + $0x38] sm:$0xff]  ;;  %s687_s17 = sand.u32 1, %s3129_s12  }
  0x5a   : > { %2819 = vmatprep.subr.msk.mxu0 %vm856_vm0, %v3458_v0  ;;  %2887 = vmatprep.subr.msk.mxu1 %vm856_vm0, %v3458_v0  ;;  %v3485_v3 = vld [vmem:[%s4131_s1 + $0x30] sm:$0xff]  ;;  %v3494_v4 = vld [vmem:[%s4131_s1 + $0x28] sm:$0xff]  ;;  %v3503_v5 = vld [vmem:[%s4131_s1 + $0x20] sm:$0xff]  ;;  %s2416_s21 = sshll.u32 %s687_s17, 10  ;;  %vm759_vm1 = vcmask 613376   ;;  %s2417_s28 = sshll.u32 %s2408_s15, 5 }
  0x5b   : > { %2820 = vmatpush3.msk.msra.mxu0 %vm856_vm0, %v3458_v0  ;;  %2888 = vmatpush3.msk.msra.mxu1 %vm856_vm0, %v3458_v0  ;;  %v3513_v6 = vld [vmem:[%s4131_s1 + $0x18] sm:$0xff]  ;;  %v3522_v7 = vld [vmem:[%s4131_s1 + $0x10] sm:$0xff]  ;;  %v3531_v8 = vld [vmem:[%s4131_s1 + $0x8] sm:$0xff]  ;;  %s3544_s27 = scalar_lea.vmem [#allocation2], %s2416_s21  ;;  %p712_p8 = scmp.lt.s32.totalorder %s2417_s28, 63 }
  0x5c   : > { %2821 = vmatprep.subr.mxu0 %v3463_v1  ;;  %2889 = vmatprep.subr.mxu1 %v3463_v1  ;;  %v3540_v9 = vld [vmem:[%s4131_s1] sm:$0xff]  ;;  %v728_v12 = vld [vmem:[%s3544_s27 + $0x8] sm:$0xff]  ;;  %v729_v14 = vld [vmem:[%s3544_s27 + $0x10] sm:$0xff] }
  0x5d   : > { %2822 = vmatpush3.msra.mxu0 %v3463_v1  ;;  %2890 = vmatpush3.msra.mxu1 %v3463_v1  ;;  %v727_v10 = vld [vmem:[%s3544_s27] sm:$0xff]  ;;  %v2453_v13 = vld [vmem:[%s3544_s27 + $0x108] sm:$0xff]  ;;  %v2454_v15 = vld [vmem:[%s3544_s27 + $0x110] sm:$0xff]  ;;  %s4162_s28 = smov (!%p712_p8, %s2417_s28), 63 }
  0x5e   : > { %2823 = vmatprep.subr.mxu0 %v3476_v2  ;;  %2891 = vmatprep.subr.mxu1 %v3476_v2  ;;  %v2452_v11 = vld [vmem:[%s3544_s27 + $0x100] sm:$0xff]  ;;  %v730_v16 = vld [vmem:[%s3544_s27 + $0x18] sm:$0xff]  ;;  %v732_v20 = vld [vmem:[%s3544_s27 + $0x28] sm:$0xff]  ;;  %s2418_s29 = sshll.u32 %s4162_s28, 3 }
  0x5f   : > { %2824 = vmatpush3.msra.mxu0 %v3476_v2  ;;  %2892 = vmatpush3.msra.mxu1 %v3476_v2  ;;  %v2455_v17 = vld [vmem:[%s3544_s27 + $0x118] sm:$0xff]  ;;  %v731_v18 = vld [vmem:[%s3544_s27 + $0x20] sm:$0xff]  ;;  %v2457_v21 = vld [vmem:[%s3544_s27 + $0x128] sm:$0xff]  ;;  %s4001_s5 = scalar_lea.vmem %s4133_s3, %s2418_s29 }
  0x60   : > { %2825 = vmatprep.subr.mxu0 %v3485_v3  ;;  %2893 = vmatprep.subr.mxu1 %v3485_v3  ;;  %v2456_v19 = vld [vmem:[%s3544_s27 + $0x120] sm:$0xff]  ;;  %v733_v22 = vld [vmem:[%s3544_s27 + $0x30] sm:$0xff]  ;;  %v734_v24 = vld [vmem:[%s3544_s27 + $0x38] sm:$0xff] }
  0x61   : > { %2826 = vmatpush3.msra.mxu0 %v3485_v3  ;;  %2894 = vmatpush3.msra.mxu1 %v3485_v3  ;;  %v2458_v23 = vld [vmem:[%s3544_s27 + $0x130] sm:$0xff]  ;;  %v2459_v25 = vld [vmem:[%s3544_s27 + $0x138] sm:$0xff]  ;;  %v735_v26 = vld [vmem:[%s3544_s27 + $0x40] sm:$0xff] }
  0x62   : > { %2827 = vmatprep.subr.mxu0 %v3494_v4  ;;  %2895 = vmatprep.subr.mxu1 %v3494_v4  ;;  %v2460_v27 = vld [vmem:[%s3544_s27 + $0x140] sm:$0xff]  ;;  %v736_v28 = vld [vmem:[%s3544_s27 + $0x48] sm:$0xff]  ;;  %v737_v30 = vld [vmem:[%s3544_s27 + $0x50] sm:$0xff] }
  0x63   : > { %2828 = vmatpush3.msra.mxu0 %v3494_v4  ;;  %2896 = vmatpush3.msra.mxu1 %v3494_v4  ;;  %v2461_v29 = vld [vmem:[%s3544_s27 + $0x148] sm:$0xff]  ;;  %v2462_v31 = vld [vmem:[%s3544_s27 + $0x150] sm:$0xff]  ;;  %v738_v32 = vld [vmem:[%s3544_s27 + $0x58] sm:$0xff] }
  0x64   : > { %2829 = vmatprep.subr.mxu0 %v3503_v5  ;;  %2897 = vmatprep.subr.mxu1 %v3503_v5  ;;  %v2463_v33 = vld [vmem:[%s3544_s27 + $0x158] sm:$0xff]  ;;  %v739_v34 = vld [vmem:[%s3544_s27 + $0x60] sm:$0xff]  ;;  %v740_v36 = vld [vmem:[%s3544_s27 + $0x68] sm:$0xff] }
  0x65   : > { %2830 = vmatpush3.msra.mxu0 %v3503_v5  ;;  %2898 = vmatpush3.msra.mxu1 %v3503_v5  ;;  %v2464_v35 = vld [vmem:[%s3544_s27 + $0x160] sm:$0xff]  ;;  %v2465_v37 = vld [vmem:[%s3544_s27 + $0x168] sm:$0xff]  ;;  %v741_v38 = vld [vmem:[%s3544_s27 + $0x70] sm:$0xff] }
  0x66   : > { %2831 = vmatprep.subr.mxu0 %v3513_v6  ;;  %2899 = vmatprep.subr.mxu1 %v3513_v6  ;;  %v2466_v39 = vld [vmem:[%s3544_s27 + $0x170] sm:$0xff]  ;;  %v742_v40 = vld [vmem:[%s3544_s27 + $0x78] sm:$0xff]  ;;  %v743_v42 = vld [vmem:[%s3544_s27 + $0x80] sm:$0xff] }
  0x67   : > { %2832 = vmatpush3.msra.mxu0 %v3513_v6  ;;  %2900 = vmatpush3.msra.mxu1 %v3513_v6  ;;  %v2467_v41 = vld [vmem:[%s3544_s27 + $0x178] sm:$0xff]  ;;  %v2468_v43 = vld [vmem:[%s3544_s27 + $0x180] sm:$0xff]  ;;  %v744_v44 = vld [vmem:[%s3544_s27 + $0x88] sm:$0xff] }
  0x68   : > { %2833 = vmatprep.subr.mxu0 %v3522_v7  ;;  %2901 = vmatprep.subr.mxu1 %v3522_v7  ;;  %v2469_v45 = vld [vmem:[%s3544_s27 + $0x188] sm:$0xff]  ;;  %v745_v46 = vld [vmem:[%s3544_s27 + $0x90] sm:$0xff]  ;;  %v746_v48 = vld [vmem:[%s3544_s27 + $0x98] sm:$0xff] }
  0x69   : > { %2834 = vmatpush3.msra.mxu0 %v3522_v7  ;;  %2902 = vmatpush3.msra.mxu1 %v3522_v7  ;;  %v2470_v47 = vld [vmem:[%s3544_s27 + $0x190] sm:$0xff]  ;;  %v2471_v49 = vld [vmem:[%s3544_s27 + $0x198] sm:$0xff]  ;;  %v747_v50 = vld [vmem:[%s3544_s27 + $0xa0] sm:$0xff] }
  0x6a   : > { %2835 = vmatprep.subr.mxu0 %v3531_v8  ;;  %2903 = vmatprep.subr.mxu1 %v3531_v8  ;;  %v2472_v51 = vld [vmem:[%s3544_s27 + $0x1a0] sm:$0xff]  ;;  %v748_v52 = vld [vmem:[%s3544_s27 + $0xa8] sm:$0xff]  ;;  %v749_v54 = vld [vmem:[%s3544_s27 + $0xb0] sm:$0xff] }
  0x6b   : > { %2836 = vmatpush3.msra.mxu0 %v3531_v8  ;;  %2904 = vmatpush3.msra.mxu1 %v3531_v8  ;;  %v2473_v53 = vld [vmem:[%s3544_s27 + $0x1a8] sm:$0xff]  ;;  %v2474_v55 = vld [vmem:[%s3544_s27 + $0x1b0] sm:$0xff]  ;;  %v750_v56 = vld [vmem:[%s3544_s27 + $0xb8] sm:$0xff] }
  0x6c   : > { %2837 = vmatprep.subr.mxu0 %v3540_v9  ;;  %2905 = vmatprep.subr.mxu1 %v3540_v9  ;;  %v2475_v57 = vld [vmem:[%s3544_s27 + $0x1b8] sm:$0xff]  ;;  %v751_v58 = vld [vmem:[%s3544_s27 + $0xc0] sm:$0xff]  ;;  %v752_v60 = vld [vmem:[%s3544_s27 + $0xc8] sm:$0xff] }
  0x6d   : > { %2838 = vmatpush3.msra.mxu0 %v3540_v9  ;;  %2839 = vmatprep.mubr.msk.f32.mxu0 %vm759_vm1, %v727_v10  ;;  %v2476_v59 = vld [vmem:[%s3544_s27 + $0x1c0] sm:$0xff]  ;;  %v2477_v61 = vld [vmem:[%s3544_s27 + $0x1c8] sm:$0xff]  ;;  %v753_v62 = vld [vmem:[%s3544_s27 + $0xd0] sm:$0xff] }
  0x6e   : > { %2906 = vmatpush3.msra.mxu1 %v3540_v9  ;;  %2907 = vmatprep.mubr.msk.f32.mxu1 %vm759_vm1, %v2452_v11  ;;  %v2478_v63 = vld [vmem:[%s3544_s27 + $0x1d0] sm:$0xff]  ;;  %v2517_v10 = vld [vmem:[%s3544_s27 + $0x200] sm:$0xff] }
  0x6f   : > { %2840 = vmatmul.mubr.msk.f32.vlgmr.msra.gmra.mxu0 %vm759_vm1, %v728_v12  ;;  %2908 = vmatmul.mubr.msk.f32.vlgmr.msra.gmra.mxu1 %vm759_vm1, %v2453_v13  ;;  %v2582_v11 = vld [vmem:[%s3544_s27 + $0x300] sm:$0xff]  ;;  %v2518_v12 = vld [vmem:[%s3544_s27 + $0x208] sm:$0xff] }
  0x70   : > { %2955 = vmatprep.subr.msk.mxu0 %vm856_vm0, %v3458_v0  ;;  %3023 = vmatprep.subr.msk.mxu1 %vm856_vm0, %v3458_v0  ;;  %v2583_v13 = vld [vmem:[%s3544_s27 + $0x308] sm:$0xff] }
  0x71   : > { %2956 = vmatpush3.msk.msra.mxu0 %vm856_vm0, %v3458_v0  ;;  %2842 = vmatprep.mubr.msk.f32.mxu0 %vm759_vm1, %v729_v14  ;;  %v2519_v14 = vld [vmem:[%s3544_s27 + $0x210] sm:$0xff] }
  0x72   : > { %2910 = vmatprep.mubr.msk.f32.mxu1 %vm759_vm1, %v2454_v15  ;;  %3024 = vmatpush3.msk.msra.mxu1 %vm856_vm0, %v3458_v0  ;;  %v754_v0 = vld [vmem:[%s3544_s27 + $0xd8] sm:$0xff]  ;;  %v2584_v15 = vld [vmem:[%s3544_s27 + $0x310] sm:$0xff] }
  0x73   : > { %2843 = vmatmul.mubr.msk.f32.gmra.mxu0 %vm759_vm1, %v730_v16  ;;  %2911 = vmatmul.mubr.msk.f32.gmra.mxu1 %vm759_vm1, %v2455_v17  ;;  %v2520_v16 = vld [vmem:[%s3544_s27 + $0x218] sm:$0xff] }
  0x74   : > { %2845 = vmatprep.mubr.msk.f32.mxu0 %vm759_vm1, %v731_v18  ;;  %2913 = vmatprep.mubr.msk.f32.mxu1 %vm759_vm1, %v2456_v19  ;;  %v2585_v17 = vld [vmem:[%s3544_s27 + $0x318] sm:$0xff]  ;;  %v2521_v18 = vld [vmem:[%s3544_s27 + $0x220] sm:$0xff] }
  0x75   : > { %2957 = vmatprep.subr.mxu0 %v3463_v1  ;;  %3025 = vmatprep.subr.mxu1 %v3463_v1  ;;  %v2586_v19 = vld [vmem:[%s3544_s27 + $0x320] sm:$0xff] }
  0x76   : > { %2958 = vmatpush3.msra.mxu0 %v3463_v1  ;;  %3026 = vmatpush3.msra.mxu1 %v3463_v1  ;;  %v2479_v1 = vld [vmem:[%s3544_s27 + $0x1d8] sm:$0xff] }
  0x77   : > { %2846 = vmatmul.mubr.msk.f32.gmra.mxu0 %vm759_vm1, %v732_v20  ;;  %2914 = vmatmul.mubr.msk.f32.gmra.mxu1 %vm759_vm1, %v2457_v21  ;;  %v2522_v20 = vld [vmem:[%s3544_s27 + $0x228] sm:$0xff] }
  0x78   : > { %2848 = vmatprep.mubr.msk.f32.mxu0 %vm759_vm1, %v733_v22  ;;  %2916 = vmatprep.mubr.msk.f32.mxu1 %vm759_vm1, %v2458_v23  ;;  %v2587_v21 = vld [vmem:[%s3544_s27 + $0x328] sm:$0xff]  ;;  %v2523_v22 = vld [vmem:[%s3544_s27 + $0x230] sm:$0xff] }
  0x79   : > { %2959 = vmatprep.subr.mxu0 %v3476_v2  ;;  %3027 = vmatprep.subr.mxu1 %v3476_v2  ;;  %v2588_v23 = vld [vmem:[%s3544_s27 + $0x330] sm:$0xff] }
  0x7a   : > { %2960 = vmatpush3.msra.mxu0 %v3476_v2  ;;  %3028 = vmatpush3.msra.mxu1 %v3476_v2  ;;  %v755_v2 = vld [vmem:[%s3544_s27 + $0xe0] sm:$0xff] }
  0x7b   : > { %2849 = vmatmul.mubr.msk.f32.gmra.mxu0 %vm759_vm1, %v734_v24  ;;  %2917 = vmatmul.mubr.msk.f32.gmra.mxu1 %vm759_vm1, %v2459_v25  ;;  %v2524_v24 = vld [vmem:[%s3544_s27 + $0x238] sm:$0xff] }
  0x7c   : > { %2851 = vmatprep.mubr.msk.f32.mxu0 %vm759_vm1, %v735_v26  ;;  %2919 = vmatprep.mubr.msk.f32.mxu1 %vm759_vm1, %v2460_v27  ;;  %v2589_v25 = vld [vmem:[%s3544_s27 + $0x338] sm:$0xff]  ;;  %v2525_v26 = vld [vmem:[%s3544_s27 + $0x240] sm:$0xff] }
  0x7d   : > { %2961 = vmatprep.subr.mxu0 %v3485_v3  ;;  %3029 = vmatprep.subr.mxu1 %v3485_v3  ;;  %v2590_v27 = vld [vmem:[%s3544_s27 + $0x340] sm:$0xff] }
  0x7e   : > { %2962 = vmatpush3.msra.mxu0 %v3485_v3  ;;  %3030 = vmatpush3.msra.mxu1 %v3485_v3  ;;  %v2480_v3 = vld [vmem:[%s3544_s27 + $0x1e0] sm:$0xff] }
  0x7f   : > { %2852 = vmatmul.mubr.msk.f32.gmra.mxu0 %vm759_vm1, %v736_v28  ;;  %2920 = vmatmul.mubr.msk.f32.gmra.mxu1 %vm759_vm1, %v2461_v29  ;;  %v2526_v28 = vld [vmem:[%s3544_s27 + $0x248] sm:$0xff] }
  0x80   : > { %2854 = vmatprep.mubr.msk.f32.mxu0 %vm759_vm1, %v737_v30  ;;  %2922 = vmatprep.mubr.msk.f32.mxu1 %vm759_vm1, %v2462_v31  ;;  %v2591_v29 = vld [vmem:[%s3544_s27 + $0x348] sm:$0xff]  ;;  %v2527_v30 = vld [vmem:[%s3544_s27 + $0x250] sm:$0xff] }
  0x81   : > { %2963 = vmatprep.subr.mxu0 %v3494_v4  ;;  %3031 = vmatprep.subr.mxu1 %v3494_v4  ;;  %v2592_v31 = vld [vmem:[%s3544_s27 + $0x350] sm:$0xff] }
  0x82   : > { %2964 = vmatpush3.msra.mxu0 %v3494_v4  ;;  %3032 = vmatpush3.msra.mxu1 %v3494_v4  ;;  %v756_v4 = vld [vmem:[%s3544_s27 + $0xe8] sm:$0xff] }
  0x83   : > { %2855 = vmatmul.mubr.msk.f32.gmra.mxu0 %vm759_vm1, %v738_v32  ;;  %2923 = vmatmul.mubr.msk.f32.gmra.mxu1 %vm759_vm1, %v2463_v33  ;;  %v2528_v32 = vld [vmem:[%s3544_s27 + $0x258] sm:$0xff] }
  0x84   : > { %2857 = vmatprep.mubr.msk.f32.mxu0 %vm759_vm1, %v739_v34  ;;  %2925 = vmatprep.mubr.msk.f32.mxu1 %vm759_vm1, %v2464_v35  ;;  %v2593_v33 = vld [vmem:[%s3544_s27 + $0x358] sm:$0xff]  ;;  %v2529_v34 = vld [vmem:[%s3544_s27 + $0x260] sm:$0xff] }
  0x85   : > { %2965 = vmatprep.subr.mxu0 %v3503_v5  ;;  %3033 = vmatprep.subr.mxu1 %v3503_v5  ;;  %v2594_v35 = vld [vmem:[%s3544_s27 + $0x360] sm:$0xff] }
  0x86   : > { %2966 = vmatpush3.msra.mxu0 %v3503_v5  ;;  %3034 = vmatpush3.msra.mxu1 %v3503_v5  ;;  %v2481_v5 = vld [vmem:[%s3544_s27 + $0x1e8] sm:$0xff] }
  0x87   : > { %2858 = vmatmul.mubr.msk.f32.gmra.mxu0 %vm759_vm1, %v740_v36  ;;  %2926 = vmatmul.mubr.msk.f32.gmra.mxu1 %vm759_vm1, %v2465_v37  ;;  %v2530_v36 = vld [vmem:[%s3544_s27 + $0x268] sm:$0xff] }
  0x88   : > { %2860 = vmatprep.mubr.msk.f32.mxu0 %vm759_vm1, %v741_v38  ;;  %2928 = vmatprep.mubr.msk.f32.mxu1 %vm759_vm1, %v2466_v39  ;;  %v2595_v37 = vld [vmem:[%s3544_s27 + $0x368] sm:$0xff]  ;;  %v2531_v38 = vld [vmem:[%s3544_s27 + $0x270] sm:$0xff] }
  0x89   : > { %2967 = vmatprep.subr.mxu0 %v3513_v6  ;;  %3035 = vmatprep.subr.mxu1 %v3513_v6  ;;  %v2596_v39 = vld [vmem:[%s3544_s27 + $0x370] sm:$0xff] }
  0x8a   : > { %2968 = vmatpush3.msra.mxu0 %v3513_v6  ;;  %3036 = vmatpush3.msra.mxu1 %v3513_v6  ;;  %v757_v6 = vld [vmem:[%s3544_s27 + $0xf0] sm:$0xff] }
  0x8b   : > { %2861 = vmatmul.mubr.msk.f32.gmra.mxu0 %vm759_vm1, %v742_v40  ;;  %2929 = vmatmul.mubr.msk.f32.gmra.mxu1 %vm759_vm1, %v2467_v41  ;;  %v2532_v40 = vld [vmem:[%s3544_s27 + $0x278] sm:$0xff] }
  0x8c   : > { %2863 = vmatprep.mubr.msk.f32.mxu0 %vm759_vm1, %v743_v42  ;;  %2931 = vmatprep.mubr.msk.f32.mxu1 %vm759_vm1, %v2468_v43  ;;  %v2597_v41 = vld [vmem:[%s3544_s27 + $0x378] sm:$0xff]  ;;  %v2533_v42 = vld [vmem:[%s3544_s27 + $0x280] sm:$0xff] }
  0x8d   : > { %2969 = vmatprep.subr.mxu0 %v3522_v7  ;;  %3037 = vmatprep.subr.mxu1 %v3522_v7  ;;  %v2598_v43 = vld [vmem:[%s3544_s27 + $0x380] sm:$0xff] }
  0x8e   : > { %2970 = vmatpush3.msra.mxu0 %v3522_v7  ;;  %3038 = vmatpush3.msra.mxu1 %v3522_v7  ;;  %v2482_v7 = vld [vmem:[%s3544_s27 + $0x1f0] sm:$0xff] }
  0x8f   : > { %2864 = vmatmul.mubr.msk.f32.gmra.mxu0 %vm759_vm1, %v744_v44  ;;  %2932 = vmatmul.mubr.msk.f32.gmra.mxu1 %vm759_vm1, %v2469_v45  ;;  %v2534_v44 = vld [vmem:[%s3544_s27 + $0x288] sm:$0xff] }
  0x90   : > { %2866 = vmatprep.mubr.msk.f32.mxu0 %vm759_vm1, %v745_v46  ;;  %2934 = vmatprep.mubr.msk.f32.mxu1 %vm759_vm1, %v2470_v47  ;;  %v2599_v45 = vld [vmem:[%s3544_s27 + $0x388] sm:$0xff]  ;;  %v2535_v46 = vld [vmem:[%s3544_s27 + $0x290] sm:$0xff] }
  0x91   : > { %2971 = vmatprep.subr.mxu0 %v3531_v8  ;;  %3039 = vmatprep.subr.mxu1 %v3531_v8  ;;  %v2600_v47 = vld [vmem:[%s3544_s27 + $0x390] sm:$0xff] }
  0x92   : > { %2972 = vmatpush3.msra.mxu0 %v3531_v8  ;;  %3040 = vmatpush3.msra.mxu1 %v3531_v8  ;;  %v758_v8 = vld [vmem:[%s3544_s27 + $0xf8] sm:$0xff] }
  0x93   : > { %2867 = vmatmul.mubr.msk.f32.gmra.mxu0 %vm759_vm1, %v746_v48  ;;  %2935 = vmatmul.mubr.msk.f32.gmra.mxu1 %vm759_vm1, %v2471_v49  ;;  %v2536_v48 = vld [vmem:[%s3544_s27 + $0x298] sm:$0xff] }
  0x94   : > { %2869 = vmatprep.mubr.msk.f32.mxu0 %vm759_vm1, %v747_v50  ;;  %2937 = vmatprep.mubr.msk.f32.mxu1 %vm759_vm1, %v2472_v51  ;;  %v2601_v49 = vld [vmem:[%s3544_s27 + $0x398] sm:$0xff]  ;;  %v2537_v50 = vld [vmem:[%s3544_s27 + $0x2a0] sm:$0xff] }
  0x95   : > { %2973 = vmatprep.subr.mxu0 %v3540_v9  ;;  %3041 = vmatprep.subr.mxu1 %v3540_v9  ;;  %v2602_v51 = vld [vmem:[%s3544_s27 + $0x3a0] sm:$0xff] }
  0x96   : > { %2974 = vmatpush3.msra.mxu0 %v3540_v9  ;;  %3042 = vmatpush3.msra.mxu1 %v3540_v9  ;;  %v2483_v9 = vld [vmem:[%s3544_s27 + $0x1f8] sm:$0xff] }
  0x97   : > { %2870 = vmatmul.mubr.msk.f32.gmra.mxu0 %vm759_vm1, %v748_v52  ;;  %2938 = vmatmul.mubr.msk.f32.gmra.mxu1 %vm759_vm1, %v2473_v53  ;;  %v2538_v52 = vld [vmem:[%s3544_s27 + $0x2a8] sm:$0xff] }
  0x98   : > { %2872 = vmatprep.mubr.msk.f32.mxu0 %vm759_vm1, %v749_v54  ;;  %2940 = vmatprep.mubr.msk.f32.mxu1 %vm759_vm1, %v2474_v55  ;;  %v2603_v53 = vld [vmem:[%s3544_s27 + $0x3a8] sm:$0xff]  ;;  %v2539_v54 = vld [vmem:[%s3544_s27 + $0x2b0] sm:$0xff] }
  0x99   : > { %v2604_v55 = vld [vmem:[%s3544_s27 + $0x3b0] sm:$0xff] }
  0x9b   : > { %2873 = vmatmul.mubr.msk.f32.gmra.mxu0 %vm759_vm1, %v750_v56  ;;  %2941 = vmatmul.mubr.msk.f32.gmra.mxu1 %vm759_vm1, %v2475_v57  ;;  %v2540_v56 = vld [vmem:[%s3544_s27 + $0x2b8] sm:$0xff] }
  0x9c   : > { %2875 = vmatprep.mubr.msk.f32.mxu0 %vm759_vm1, %v751_v58  ;;  %2943 = vmatprep.mubr.msk.f32.mxu1 %vm759_vm1, %v2476_v59  ;;  %v2605_v57 = vld [vmem:[%s3544_s27 + $0x3b8] sm:$0xff]  ;;  %v2541_v58 = vld [vmem:[%s3544_s27 + $0x2c0] sm:$0xff] }
  0x9d   : > { %v2606_v59 = vld [vmem:[%s3544_s27 + $0x3c0] sm:$0xff] }
  0x9f   : > { %2876 = vmatmul.mubr.msk.f32.gmra.mxu0 %vm759_vm1, %v752_v60  ;;  %2944 = vmatmul.mubr.msk.f32.gmra.mxu1 %vm759_vm1, %v2477_v61  ;;  %v2542_v60 = vld [vmem:[%s3544_s27 + $0x2c8] sm:$0xff] }
  0xa0   : > { %2878 = vmatprep.mubr.msk.f32.mxu0 %vm759_vm1, %v753_v62  ;;  %2946 = vmatprep.mubr.msk.f32.mxu1 %vm759_vm1, %v2478_v63  ;;  %v2607_v61 = vld [vmem:[%s3544_s27 + $0x3c8] sm:$0xff]  ;;  %v2543_v62 = vld [vmem:[%s3544_s27 + $0x2d0] sm:$0xff] }
  0xa1   : > { %v2608_v63 = vld [vmem:[%s3544_s27 + $0x3d0] sm:$0xff] }
  0xa3   : > { %2879 = vmatmul.mubr.msk.f32.gmra.mxu0 %vm759_vm1, %v754_v0  ;;  %2947 = vmatmul.mubr.msk.f32.gmra.mxu1 %vm759_vm1, %v2479_v1  ;;  %v2544_v0 = vld [vmem:[%s3544_s27 + $0x2d8] sm:$0xff] }
  0xa4   : > { %2881 = vmatprep.mubr.msk.f32.mxu0 %vm759_vm1, %v755_v2  ;;  %2949 = vmatprep.mubr.msk.f32.mxu1 %vm759_vm1, %v2480_v3  ;;  %v2609_v1 = vld [vmem:[%s3544_s27 + $0x3d8] sm:$0xff]  ;;  %v2545_v2 = vld [vmem:[%s3544_s27 + $0x2e0] sm:$0xff] }
  0xa5   : > { %v2610_v3 = vld [vmem:[%s3544_s27 + $0x3e0] sm:$0xff] }
  0xa7   : > { %2882 = vmatmul.mubr.msk.f32.gmra.mxu0 %vm759_vm1, %v756_v4  ;;  %2950 = vmatmul.mubr.msk.f32.gmra.mxu1 %vm759_vm1, %v2481_v5  ;;  %v2546_v4 = vld [vmem:[%s3544_s27 + $0x2e8] sm:$0xff] }
  0xa8   : > { %2884 = vmatprep.mubr.msk.f32.mxu0 %vm759_vm1, %v757_v6  ;;  %2952 = vmatprep.mubr.msk.f32.mxu1 %vm759_vm1, %v2482_v7  ;;  %v2611_v5 = vld [vmem:[%s3544_s27 + $0x3e8] sm:$0xff]  ;;  %v2547_v6 = vld [vmem:[%s3544_s27 + $0x2f0] sm:$0xff] }
  0xa9   : > { %v2612_v7 = vld [vmem:[%s3544_s27 + $0x3f0] sm:$0xff] }
  0xab   : > { %2885 = vmatmul.mubr.msk.f32.gmra.mxu0 %vm759_vm1, %v758_v8  ;;  %2953 = vmatmul.mubr.msk.f32.gmra.mxu1 %vm759_vm1, %v2483_v9  ;;  %v2548_v8 = vld [vmem:[%s3544_s27 + $0x2f8] sm:$0xff] }
  0xac   : > { %2975 = vmatprep.mubr.msk.f32.mxu0 %vm759_vm1, %v2517_v10  ;;  %3043 = vmatprep.mubr.msk.f32.mxu1 %vm759_vm1, %v2582_v11  ;;  %v2613_v9 = vld [vmem:[%s3544_s27 + $0x3f8] sm:$0xff] }
  0xaf   : > { %2976 = vmatmul.mubr.msk.f32.vlgmr.msra.gmra.mxu0 %vm759_vm1, %v2518_v12  ;;  %3044 = vmatmul.mubr.msk.f32.vlgmr.msra.gmra.mxu1 %vm759_vm1, %v2583_v13 }
  0xb0   : > { %2978 = vmatprep.mubr.msk.f32.mxu0 %vm759_vm1, %v2519_v14  ;;  %3046 = vmatprep.mubr.msk.f32.mxu1 %vm759_vm1, %v2584_v15 }
  0xb3   : > { %2979 = vmatmul.mubr.msk.f32.gmra.mxu0 %vm759_vm1, %v2520_v16  ;;  %3047 = vmatmul.mubr.msk.f32.gmra.mxu1 %vm759_vm1, %v2585_v17 }
  0xb4   : > { %2981 = vmatprep.mubr.msk.f32.mxu0 %vm759_vm1, %v2521_v18  ;;  %3049 = vmatprep.mubr.msk.f32.mxu1 %vm759_vm1, %v2586_v19 }
  0xb7   : > { %2982 = vmatmul.mubr.msk.f32.gmra.mxu0 %vm759_vm1, %v2522_v20  ;;  %3050 = vmatmul.mubr.msk.f32.gmra.mxu1 %vm759_vm1, %v2587_v21 }
  0xb8   : > { %2984 = vmatprep.mubr.msk.f32.mxu0 %vm759_vm1, %v2523_v22  ;;  %3052 = vmatprep.mubr.msk.f32.mxu1 %vm759_vm1, %v2588_v23 }
  0xbb   : > { %2985 = vmatmul.mubr.msk.f32.gmra.mxu0 %vm759_vm1, %v2524_v24  ;;  %3053 = vmatmul.mubr.msk.f32.gmra.mxu1 %vm759_vm1, %v2589_v25 }
  0xbc   : > { %2987 = vmatprep.mubr.msk.f32.mxu0 %vm759_vm1, %v2525_v26  ;;  %3055 = vmatprep.mubr.msk.f32.mxu1 %vm759_vm1, %v2590_v27 }
  0xbf   : > { %2988 = vmatmul.mubr.msk.f32.gmra.mxu0 %vm759_vm1, %v2526_v28  ;;  %3056 = vmatmul.mubr.msk.f32.gmra.mxu1 %vm759_vm1, %v2591_v29 }
  0xc0   : > { %2990 = vmatprep.mubr.msk.f32.mxu0 %vm759_vm1, %v2527_v30  ;;  %3058 = vmatprep.mubr.msk.f32.mxu1 %vm759_vm1, %v2592_v31 }
  0xc3   : > { %2991 = vmatmul.mubr.msk.f32.gmra.mxu0 %vm759_vm1, %v2528_v32  ;;  %3059 = vmatmul.mubr.msk.f32.gmra.mxu1 %vm759_vm1, %v2593_v33 }
  0xc4   : > { %2993 = vmatprep.mubr.msk.f32.mxu0 %vm759_vm1, %v2529_v34  ;;  %3061 = vmatprep.mubr.msk.f32.mxu1 %vm759_vm1, %v2594_v35 }
  0xc7   : > { %2994 = vmatmul.mubr.msk.f32.gmra.mxu0 %vm759_vm1, %v2530_v36  ;;  %3062 = vmatmul.mubr.msk.f32.gmra.mxu1 %vm759_vm1, %v2595_v37 }
  0xc8   : > { %2996 = vmatprep.mubr.msk.f32.mxu0 %vm759_vm1, %v2531_v38  ;;  %3064 = vmatprep.mubr.msk.f32.mxu1 %vm759_vm1, %v2596_v39 }
  0xcb   : > { %2997 = vmatmul.mubr.msk.f32.gmra.mxu0 %vm759_vm1, %v2532_v40  ;;  %3065 = vmatmul.mubr.msk.f32.gmra.mxu1 %vm759_vm1, %v2597_v41 }
  0xcc   : > { %2999 = vmatprep.mubr.msk.f32.mxu0 %vm759_vm1, %v2533_v42  ;;  %3067 = vmatprep.mubr.msk.f32.mxu1 %vm759_vm1, %v2598_v43 }
  0xcf   : > { %3000 = vmatmul.mubr.msk.f32.gmra.mxu0 %vm759_vm1, %v2534_v44  ;;  %3068 = vmatmul.mubr.msk.f32.gmra.mxu1 %vm759_vm1, %v2599_v45 }
  0xd0   : > { %3002 = vmatprep.mubr.msk.f32.mxu0 %vm759_vm1, %v2535_v46  ;;  %3070 = vmatprep.mubr.msk.f32.mxu1 %vm759_vm1, %v2600_v47 }
  0xd3   : > { %3003 = vmatmul.mubr.msk.f32.gmra.mxu0 %vm759_vm1, %v2536_v48  ;;  %3071 = vmatmul.mubr.msk.f32.gmra.mxu1 %vm759_vm1, %v2601_v49 }
  0xd4   : > { %3005 = vmatprep.mubr.msk.f32.mxu0 %vm759_vm1, %v2537_v50  ;;  %3073 = vmatprep.mubr.msk.f32.mxu1 %vm759_vm1, %v2602_v51 }
  0xd7   : > { %3006 = vmatmul.mubr.msk.f32.gmra.mxu0 %vm759_vm1, %v2538_v52  ;;  %3074 = vmatmul.mubr.msk.f32.gmra.mxu1 %vm759_vm1, %v2603_v53 }
  0xd8   : > { %3008 = vmatprep.mubr.msk.f32.mxu0 %vm759_vm1, %v2539_v54  ;;  %3076 = vmatprep.mubr.msk.f32.mxu1 %vm759_vm1, %v2604_v55 }
  0xdb   : > { %3009 = vmatmul.mubr.msk.f32.gmra.mxu0 %vm759_vm1, %v2540_v56  ;;  %3077 = vmatmul.mubr.msk.f32.gmra.mxu1 %vm759_vm1, %v2605_v57 }
  0xdc   : > { %3011 = vmatprep.mubr.msk.f32.mxu0 %vm759_vm1, %v2541_v58  ;;  %3079 = vmatprep.mubr.msk.f32.mxu1 %vm759_vm1, %v2606_v59 }
  0xdf   : > { %3012 = vmatmul.mubr.msk.f32.gmra.mxu0 %vm759_vm1, %v2542_v60  ;;  %3080 = vmatmul.mubr.msk.f32.gmra.mxu1 %vm759_vm1, %v2607_v61 }
  0xe0   : > { %3014 = vmatprep.mubr.msk.f32.mxu0 %vm759_vm1, %v2543_v62  ;;  %3082 = vmatprep.mubr.msk.f32.mxu1 %vm759_vm1, %v2608_v63 }
  0xe3   : > { %3015 = vmatmul.mubr.msk.f32.gmra.mxu0 %vm759_vm1, %v2544_v0  ;;  %3083 = vmatmul.mubr.msk.f32.gmra.mxu1 %vm759_vm1, %v2609_v1 }
  0xe4   : > { %3017 = vmatprep.mubr.msk.f32.mxu0 %vm759_vm1, %v2545_v2  ;;  %3085 = vmatprep.mubr.msk.f32.mxu1 %vm759_vm1, %v2610_v3 }
  0xe7   : > { %3018 = vmatmul.mubr.msk.f32.gmra.mxu0 %vm759_vm1, %v2546_v4  ;;  %3086 = vmatmul.mubr.msk.f32.gmra.mxu1 %vm759_vm1, %v2611_v5 }
  0xe8   : > { %3020 = vmatprep.mubr.msk.f32.mxu0 %vm759_vm1, %v2547_v6  ;;  %3088 = vmatprep.mubr.msk.f32.mxu1 %vm759_vm1, %v2612_v7 }
  0xeb   : > { %3021 = vmatmul.mubr.msk.f32.gmra.mxu0 %vm759_vm1, %v2548_v8  ;;  %3089 = vmatmul.mubr.msk.f32.gmra.mxu1 %vm759_vm1, %v2613_v9 }
 0x12f   : > { %v3852_v10 = vpop.f32.mrf.mxu0  ;;  %v3854_v11 = vpop.f32.mrf.mxu1 }
 0x131   : > { %v3856_v12 = vpop.f32.mrf.mxu0  ;;  %v3858_v13 = vpop.f32.mrf.mxu1 }
 0x133   : > { %v3860_v14 = vpop.f32.mrf.mxu0  ;;  %v3862_v15 = vpop.f32.mrf.mxu1 }
 0x135   : > { %v3864_v16 = vpop.f32.mrf.mxu0  ;;  %v3866_v17 = vpop.f32.mrf.mxu1 }
 0x137   : > { %v3868_v18 = vpop.f32.mrf.mxu0  ;;  %v3870_v19 = vpop.f32.mrf.mxu1 }
 0x139   : > { %v3872_v20 = vpop.f32.mrf.mxu0  ;;  %v3874_v21 = vpop.f32.mrf.mxu1 }
 0x13b   : > { %v3876_v22 = vpop.f32.mrf.mxu0  ;;  %v3878_v23 = vpop.f32.mrf.mxu1 }
 0x13d   : > { %v3880_v24 = vpop.f32.mrf.mxu0  ;;  %v3882_v25 = vpop.f32.mrf.mxu1 }
 0x13f   : > { %v3884_v26 = vpop.f32.mrf.mxu0  ;;  %v3886_v27 = vpop.f32.mrf.mxu1 }
 0x141   : > { %v3888_v28 = vpop.f32.mrf.mxu0  ;;  %v3890_v29 = vpop.f32.mrf.mxu1 }
 0x143   : > { %v3892_v30 = vpop.f32.mrf.mxu0  ;;  %v3894_v31 = vpop.f32.mrf.mxu1 }
 0x145   : > { %v3896_v32 = vpop.f32.mrf.mxu0  ;;  %v3898_v33 = vpop.f32.mrf.mxu1 }
 0x147   : > { %v3900_v34 = vpop.f32.mrf.mxu0  ;;  %v3902_v35 = vpop.f32.mrf.mxu1 }
 0x149   : > { %v3904_v36 = vpop.f32.mrf.mxu0  ;;  %v3906_v37 = vpop.f32.mrf.mxu1 }
 0x14b   : > { %v3908_v38 = vpop.f32.mrf.mxu0  ;;  %v3910_v39 = vpop.f32.mrf.mxu1 }
 0x14d   : > { %v3912_v40 = vpop.f32.mrf.mxu0  ;;  %v3914_v41 = vpop.f32.mrf.mxu1 }
 0x14f   : > { %v3916_v42 = vpop.f32.mrf.mxu0  ;;  %v3918_v43 = vpop.f32.mrf.mxu1 }
 0x151   : > { %v3920_v44 = vpop.f32.mrf.mxu0  ;;  %v3922_v45 = vpop.f32.mrf.mxu1 }
 0x153   : > { %v3924_v46 = vpop.f32.mrf.mxu0  ;;  %v3926_v47 = vpop.f32.mrf.mxu1 }
 0x155   : > { %v3928_v48 = vpop.f32.mrf.mxu0  ;;  %v3930_v49 = vpop.f32.mrf.mxu1 }
 0x157   : > { %v3932_v50 = vpop.f32.mrf.mxu0  ;;  %v3934_v51 = vpop.f32.mrf.mxu1 }
 0x159   : > { %v3936_v52 = vpop.f32.mrf.mxu0  ;;  %v3938_v53 = vpop.f32.mrf.mxu1 }
 0x15b   : > { %v3940_v54 = vpop.f32.mrf.mxu0  ;;  %v3942_v55 = vpop.f32.mrf.mxu1 }
 0x15d   : > { %v3944_v56 = vpop.f32.mrf.mxu0  ;;  %v3946_v57 = vpop.f32.mrf.mxu1 }
 0x15f   : > { %v3948_v58 = vpop.f32.mrf.mxu0  ;;  %v3950_v59 = vpop.f32.mrf.mxu1 }
 0x161   : > { %v3952_v60 = vpop.f32.mrf.mxu0  ;;  %v3954_v61 = vpop.f32.mrf.mxu1 }
 0x163   : > { %v3956_v62 = vpop.f32.mrf.mxu0  ;;  %v3958_v63 = vpop.f32.mrf.mxu1 }
 0x164   : > { %4134 = vst [vmem:[#allocation3_spill] sm:$0xff] %v3956_v62  ;;  %4135 = vst [vmem:[#allocation4_spill] sm:$0xff] %v3958_v63  ;;  %v1441_v63 = vmax.f32 %v3864_v16, %v3866_v17 }
 0x165   : > { %v3960_v0 = vpop.f32.mrf.mxu0  ;;  %v3962_v1 = vpop.f32.mrf.mxu1 }
 0x166   : > { %4136 = vst [vmem:[#allocation5_spill] sm:$0xff] %v3960_v0  ;;  %4137 = vst [vmem:[#allocation6_spill] sm:$0xff] %v3962_v1 }
 0x167   : > { %v3964_v2 = vpop.f32.mrf.mxu0  ;;  %v3966_v3 = vpop.f32.mrf.mxu1 }
 0x168   : > { %4138 = vst [vmem:[#allocation7_spill] sm:$0xff] %v3964_v2  ;;  %4139 = vst [vmem:[#allocation8_spill] sm:$0xff] %v3966_v3  ;;  %v1440_v2 = vmax.f32 %v3852_v10, %v3854_v11 }
 0x169   : > { %v3970_v4 = vpop.f32.mrf.mxu0  ;;  %v3972_v5 = vpop.f32.mrf.mxu1 }
 0x16a   : > { %4140 = vst [vmem:[#allocation9_spill] sm:$0xff] %v3970_v4  ;;  %4141 = vst [vmem:[#allocation10_spill] sm:$0xff] %v3972_v5  ;;  %v1439_v4 = vmax.f32 %v3856_v12, %v3858_v13 }
 0x16b   : > { %v3974_v6 = vpop.f32.mrf.mxu0  ;;  %v3976_v7 = vpop.f32.mrf.mxu1 }
 0x16c   : > { %4142 = vst [vmem:[#allocation11_spill] sm:$0xff] %v3974_v6  ;;  %4143 = vst [vmem:[#allocation12_spill] sm:$0xff] %v3976_v7  ;;  %v3989_v6 = vld [vmem:[%s4132_s2] ss:$0 sm:$0xff] }
 0x16d   : > { %v3978_v8 = vpop.f32.mrf.mxu0  ;;  %v3980_v9 = vpop.f32.mrf.mxu1 }
 0x16e   : > { %4144 = vst [vmem:[#allocation13_spill] sm:$0xff] %v3978_v8  ;;  %4145 = vst [vmem:[#allocation14_spill] sm:$0xff] %v3980_v9  ;;  %v1442_v8 = vmax.f32 %v3860_v14, %v3862_v15 }
 0x16f   : > { %v2977_v3 = vpop.f32.mrf.mxu0  ;;  %v3045_v0 = vpop.f32.mrf.mxu1 }
 0x170   : > { %v1826_v1 = vmax.f32 %v1440_v2, %v2977_v3  ;;  %v1444_v3 = vmax.f32 %v3868_v18, %v3870_v19 }
 0x171   : > { %v1666_v7 = vpop.f32.mrf.mxu0  ;;  %v2052_v5 = vpop.f32.mrf.mxu1 }
 0x172   : > { %v2212_v9 = vmax.f32 %v1826_v1, %v3045_v0  ;;  %v1825_v10 = vmax.f32 %v1439_v4, %v1666_v7  ;;  %v1443_v4 = vmax.f32 %v3872_v20, %v3874_v21 }
 0x173   : > { %v2980_v11 = vpop.f32.mrf.mxu0  ;;  %v3048_v62 = vpop.f32.mrf.mxu1 }
 0x174   : > { %v2251_v12 = vadd.f32 %v3989_v6, %v2212_v9  ;;  %v2211_v13 = vmax.f32 %v1825_v10, %v2052_v5  ;;  %v1828_v2 = vmax.f32 %v1442_v8, %v2980_v11  ;;  %v1446_v10 = vmax.f32 %v3876_v22, %v3878_v23 }
 0x175   : > { %v1676_v14 = vpop.f32.mrf.mxu0  ;;  %v2062_v15 = vpop.f32.mrf.mxu1 }
 0x176   : > { %v2283_v0 = vmax.f32 %v2251_v12, 0.0  ;;  %v2250_v1 = vadd.f32 %v3989_v6, %v2211_v13  ;;  %v2214_v16 = vmax.f32 %v1828_v2, %v3048_v62  ;;  %v1827_v17 = vmax.f32 %v1441_v63, %v1676_v14 }
 0x177   : > { %v2983_v5 = vpop.f32.mrf.mxu0  ;;  %v3051_v7 = vpop.f32.mrf.mxu1  ;;  %v1445_v13 = vmax.f32 %v3880_v24, %v3882_v25 }
 0x178   : > { %2315 = vst [vmem:[%s4001_s5 + $0x8] sm:$0xff] %v2283_v0  ;;  %v2282_v18 = vmax.f32 %v2250_v1, 0.0  ;;  %v2253_v19 = vadd.f32 %v3989_v6, %v2214_v16  ;;  %v2213_v8 = vmax.f32 %v1827_v17, %v2062_v15  ;;  %v1830_v9 = vmax.f32 %v1444_v3, %v2983_v5 }
 0x179   : > { %v1686_v11 = vpop.f32.mrf.mxu0  ;;  %v2072_v12 = vpop.f32.mrf.mxu1  ;;  %v1448_v0 = vmax.f32 %v3884_v26, %v3886_v27  ;;  %v1447_v5 = vmax.f32 %v3888_v28, %v3890_v29 }
 0x17a   : > { %2314 = vst [vmem:[%s4001_s5] sm:$0xff] %v2282_v18  ;;  %v2285_v62 = vmax.f32 %v2253_v19, 0.0  ;;  %v2252_v63 = vadd.f32 %v3989_v6, %v2213_v8  ;;  %v2216_v20 = vmax.f32 %v1830_v9, %v3051_v7  ;;  %v1829_v21 = vmax.f32 %v1443_v4, %v1686_v11 }
 0x17b   : > { %v2986_v2 = vpop.f32.mrf.mxu0  ;;  %v3054_v14 = vpop.f32.mrf.mxu1  ;;  %v1450_v9 = vmax.f32 %v3892_v30, %v3894_v31 }
 0x17c   : > { %2317 = vst [vmem:[%s4001_s5 + $0x18] sm:$0xff] %v2285_v62  ;;  %v2284_v3 = vmax.f32 %v2252_v63, 0.0  ;;  %v2255_v15 = vadd.f32 %v3989_v6, %v2216_v20  ;;  %v2215_v22 = vmax.f32 %v1829_v21, %v2072_v12  ;;  %v1832_v23 = vmax.f32 %v1446_v10, %v2986_v2 }
 0x17d   : > { %v1696_v1 = vpop.f32.mrf.mxu0  ;;  %v2082_v16 = vpop.f32.mrf.mxu1  ;;  %v1449_v63 = vmax.f32 %v3896_v32, %v3898_v33 }
 0x17e   : > { %2316 = vst [vmem:[%s4001_s5 + $0x10] sm:$0xff] %v2284_v3  ;;  %v2287_v17 = vmax.f32 %v2255_v15, 0.0  ;;  %v2254_v4 = vadd.f32 %v3989_v6, %v2215_v22  ;;  %v2218_v24 = vmax.f32 %v1832_v23, %v3054_v14  ;;  %v1831_v25 = vmax.f32 %v1445_v13, %v1696_v1 }
 0x17f   : > { %v2989_v7 = vpop.f32.mrf.mxu0  ;;  %v3057_v18 = vpop.f32.mrf.mxu1  ;;  %v1452_v14 = vmax.f32 %v3900_v34, %v3902_v35 }
 0x180   : > { %2319 = vst [vmem:[%s4001_s5 + $0x28] sm:$0xff] %v2287_v17  ;;  %v2286_v19 = vmax.f32 %v2254_v4, 0.0  ;;  %v2257_v8 = vadd.f32 %v3989_v6, %v2218_v24  ;;  %v2217_v26 = vmax.f32 %v1831_v25, %v2082_v16  ;;  %v1834_v27 = vmax.f32 %v1448_v0, %v2989_v7 }
 0x181   : > { %v1706_v10 = vpop.f32.mrf.mxu0  ;;  %v2092_v11 = vpop.f32.mrf.mxu1  ;;  %v1451_v0 = vmax.f32 %v3904_v36, %v3906_v37  ;;  %v1454_v24 = vmax.f32 %v3908_v38, %v3910_v39 }
 0x182   : > { %2318 = vst [vmem:[%s4001_s5 + $0x20] sm:$0xff] %v2286_v19  ;;  %v2289_v12 = vmax.f32 %v2257_v8, 0.0  ;;  %v2256_v62 = vadd.f32 %v3989_v6, %v2217_v26  ;;  %v2220_v28 = vmax.f32 %v1834_v27, %v3057_v18  ;;  %v1833_v29 = vmax.f32 %v1447_v5, %v1706_v10 }
 0x183   : > { %v2992_v20 = vpop.f32.mrf.mxu0  ;;  %v3060_v21 = vpop.f32.mrf.mxu1  ;;  %v1453_v19 = vmax.f32 %v3912_v40, %v3914_v41  ;;  %v1456_v10 = vmax.f32 %v3916_v42, %v3918_v43 }
 0x184   : > { %2321 = vst [vmem:[%s4001_s5 + $0x38] sm:$0xff] %v2289_v12  ;;  %v2288_v13 = vmax.f32 %v2256_v62, 0.0  ;;  %v2259_v2 = vadd.f32 %v3989_v6, %v2220_v28  ;;  %v2219_v30 = vmax.f32 %v1833_v29, %v2092_v11  ;;  %v1836_v31 = vmax.f32 %v1450_v9, %v2992_v20 }
 0x185   : > { %v1716_v3 = vpop.f32.mrf.mxu0  ;;  %v2102_v15 = vpop.f32.mrf.mxu1  ;;  %v1455_v29 = vmax.f32 %v3920_v44, %v3922_v45 }
 0x186   : > { %2320 = vst [vmem:[%s4001_s5 + $0x30] sm:$0xff] %v2288_v13  ;;  %v2291_v22 = vmax.f32 %v2259_v2, 0.0  ;;  %v2258_v23 = vadd.f32 %v3989_v6, %v2219_v30  ;;  %v2222_v32 = vmax.f32 %v1836_v31, %v3060_v21  ;;  %v1835_v33 = vmax.f32 %v1449_v63, %v1716_v3 }
 0x187   : > { %v2995_v1 = vpop.f32.mrf.mxu0  ;;  %v3063_v16 = vpop.f32.mrf.mxu1  ;;  %v1458_v2 = vmax.f32 %v3924_v46, %v3926_v47 }
 0x188   : > { %2323 = vst [vmem:[%s4001_s5 + $0x48] sm:$0xff] %v2291_v22  ;;  %v2290_v17 = vmax.f32 %v2258_v23, 0.0  ;;  %v2261_v4 = vadd.f32 %v3989_v6, %v2222_v32  ;;  %v2221_v34 = vmax.f32 %v1835_v33, %v2102_v15  ;;  %v1838_v35 = vmax.f32 %v1452_v14, %v2995_v1 }
 0x189   : > { %v1726_v25 = vpop.f32.mrf.mxu0  ;;  %v2112_v5 = vpop.f32.mrf.mxu1  ;;  %v1457_v15 = vmax.f32 %v3928_v48, %v3930_v49 }
 0x18a   : > { %2322 = vst [vmem:[%s4001_s5 + $0x40] sm:$0xff] %v2290_v17  ;;  %v2293_v7 = vmax.f32 %v2261_v4, 0.0  ;;  %v2260_v18 = vadd.f32 %v3989_v6, %v2221_v34  ;;  %v2224_v36 = vmax.f32 %v1838_v35, %v3063_v16  ;;  %v1837_v37 = vmax.f32 %v1451_v0, %v1726_v25 }
 0x18b   : > { %v2998_v8 = vpop.f32.mrf.mxu0  ;;  %v3066_v26 = vpop.f32.mrf.mxu1  ;;  %v1460_v0 = vmax.f32 %v3932_v50, %v3934_v51  ;;  %v1459_v34 = vmax.f32 %v3936_v52, %v3938_v53 }
 0x18c   : > { %2325 = vst [vmem:[%s4001_s5 + $0x58] sm:$0xff] %v2293_v7  ;;  %v2292_v27 = vmax.f32 %v2260_v18, 0.0  ;;  %v2263_v9 = vadd.f32 %v3989_v6, %v2224_v36  ;;  %v2223_v38 = vmax.f32 %v1837_v37, %v2112_v5  ;;  %v1840_v39 = vmax.f32 %v1454_v24, %v2998_v8 }
 0x18d   : > { %v1736_v11 = vpop.f32.mrf.mxu0  ;;  %v2122_v12 = vpop.f32.mrf.mxu1  ;;  %v1462_v7 = vmax.f32 %v3940_v54, %v3942_v55  ;;  %v1461_v8 = vmax.f32 %v3944_v56, %v3946_v57 }
 0x18e   : > { %2324 = vst [vmem:[%s4001_s5 + $0x50] sm:$0xff] %v2292_v27  ;;  %v2295_v62 = vmax.f32 %v2263_v9, 0.0  ;;  %v2262_v28 = vadd.f32 %v3989_v6, %v2223_v38  ;;  %v2226_v40 = vmax.f32 %v1840_v39, %v3066_v26  ;;  %v1839_v41 = vmax.f32 %v1453_v19, %v1736_v11 }
 0x18f   : > { %v3001_v63 = vpop.f32.mrf.mxu0  ;;  %v3069_v20 = vpop.f32.mrf.mxu1  ;;  %v1464_v39 = vmax.f32 %v3948_v58, %v3950_v59 }
 0x190   : > { %2327 = vst [vmem:[%s4001_s5 + $0x68] sm:$0xff] %v2295_v62  ;;  %v2294_v21 = vmax.f32 %v2262_v28, 0.0  ;;  %v2265_v13 = vadd.f32 %v3989_v6, %v2226_v40  ;;  %v2225_v42 = vmax.f32 %v1839_v41, %v2122_v12  ;;  %v1842_v43 = vmax.f32 %v1456_v10, %v3001_v63 }
 0x191   : > { %v1746_v30 = vpop.f32.mrf.mxu0  ;;  %v2132_v31 = vpop.f32.mrf.mxu1  ;;  %v1463_v28 = vmax.f32 %v3952_v60, %v3954_v61 }
 0x192   : > { %2326 = vst [vmem:[%s4001_s5 + $0x60] sm:$0xff] %v2294_v21  ;;  %v2297_v14 = vmax.f32 %v2265_v13, 0.0  ;;  %v2264_v3 = vadd.f32 %v3989_v6, %v2225_v42  ;;  %v2228_v44 = vmax.f32 %v1842_v43, %v3069_v20  ;;  %v1841_v45 = vmax.f32 %v1455_v29, %v1746_v30  ;;  %v4146_v20 = vld [vmem:[#allocation4_spill] sm:$0xff]  ;;  %v4147_v21 = vld [vmem:[#allocation3_spill] sm:$0xff] }
 0x193   : > { %v3004_v22 = vpop.f32.mrf.mxu0  ;;  %v3072_v23 = vpop.f32.mrf.mxu1  ;;  %v1466_v13 = vmax.f32 %v4147_v21, %v4146_v20 }
 0x194   : > { %2329 = vst [vmem:[%s4001_s5 + $0x78] sm:$0xff] %v2297_v14  ;;  %v2296_v32 = vmax.f32 %v2264_v3, 0.0  ;;  %v2267_v33 = vadd.f32 %v3989_v6, %v2228_v44  ;;  %v2227_v46 = vmax.f32 %v1841_v45, %v2132_v31  ;;  %v1844_v47 = vmax.f32 %v1458_v2, %v3004_v22  ;;  %v4148_v31 = vld [vmem:[#allocation6_spill] sm:$0xff]  ;;  %v4149_v14 = vld [vmem:[#allocation5_spill] sm:$0xff] }
 0x195   : > { %v1756_v1 = vpop.f32.mrf.mxu0  ;;  %v2142_v16 = vpop.f32.mrf.mxu1  ;;  %v1465_v3 = vmax.f32 %v4149_v14, %v4148_v31 }
 0x196   : > { %2328 = vst [vmem:[%s4001_s5 + $0x70] sm:$0xff] %v2296_v32  ;;  %v2299_v17 = vmax.f32 %v2267_v33, 0.0  ;;  %v2266_v4 = vadd.f32 %v3989_v6, %v2227_v46  ;;  %v2230_v48 = vmax.f32 %v1844_v47, %v3072_v23  ;;  %v1843_v49 = vmax.f32 %v1457_v15, %v1756_v1  ;;  %v4150_v33 = vld [vmem:[#allocation8_spill] sm:$0xff]  ;;  %v4151_v46 = vld [vmem:[#allocation7_spill] sm:$0xff] }
 0x197   : > { %v3007_v35 = vpop.f32.mrf.mxu0  ;;  %v3075_v24 = vpop.f32.mrf.mxu1  ;;  %v1468_v47 = vmax.f32 %v4151_v46, %v4150_v33 }
 0x198   : > { %2331 = vst [vmem:[%s4001_s5 + $0x88] sm:$0xff] %v2299_v17  ;;  %v2298_v25 = vmax.f32 %v2266_v4, 0.0  ;;  %v2269_v5 = vadd.f32 %v3989_v6, %v2230_v48  ;;  %v2229_v50 = vmax.f32 %v1843_v49, %v2142_v16  ;;  %v1846_v51 = vmax.f32 %v1460_v0, %v3007_v35  ;;  %v4152_v49 = vld [vmem:[#allocation10_spill] sm:$0xff] }
 0x199   : > { %v1766_v18 = vpop.f32.mrf.mxu0  ;;  %v2152_v36 = vpop.f32.mrf.mxu1 }
 0x19a   : > { %2330 = vst [vmem:[%s4001_s5 + $0x80] sm:$0xff] %v2298_v25  ;;  %v2301_v37 = vmax.f32 %v2269_v5, 0.0  ;;  %v2268_v19 = vadd.f32 %v3989_v6, %v2229_v50  ;;  %v2232_v52 = vmax.f32 %v1846_v51, %v3075_v24  ;;  %v1845_v53 = vmax.f32 %v1459_v34, %v1766_v18  ;;  %v4153_v34 = vld [vmem:[#allocation9_spill] sm:$0xff]  ;;  %v4154_v18 = vld [vmem:[#allocation12_spill] sm:$0xff] }
 0x19b   : > { %v3010_v26 = vpop.f32.mrf.mxu0  ;;  %v3078_v27 = vpop.f32.mrf.mxu1  ;;  %v1467_v35 = vmax.f32 %v4153_v34, %v4152_v49 }
 0x19c   : > { %2333 = vst [vmem:[%s4001_s5 + $0x98] sm:$0xff] %v2301_v37  ;;  %v2300_v9 = vmax.f32 %v2268_v19, 0.0  ;;  %v2271_v38 = vadd.f32 %v3989_v6, %v2232_v52  ;;  %v2231_v54 = vmax.f32 %v1845_v53, %v2152_v36  ;;  %v1848_v55 = vmax.f32 %v1462_v7, %v3010_v26  ;;  %v4155_v36 = vld [vmem:[#allocation11_spill] sm:$0xff] }
 0x19d   : > { %v1776_v10 = vpop.f32.mrf.mxu0  ;;  %v2162_v11 = vpop.f32.mrf.mxu1  ;;  %v1470_v37 = vmax.f32 %v4155_v36, %v4154_v18 }
 0x19e   : > { %2332 = vst [vmem:[%s4001_s5 + $0x90] sm:$0xff] %v2300_v9  ;;  %v2303_v12 = vmax.f32 %v2271_v38, 0.0  ;;  %v2270_v62 = vadd.f32 %v3989_v6, %v2231_v54  ;;  %v2234_v56 = vmax.f32 %v1848_v55, %v3078_v27  ;;  %v1847_v57 = vmax.f32 %v1461_v8, %v1776_v10  ;;  %v4156_v9 = vld [vmem:[#allocation14_spill] sm:$0xff]  ;;  %v4157_v38 = vld [vmem:[#allocation13_spill] sm:$0xff] }
 0x19f   : > { %v3013_v40 = vpop.f32.mrf.mxu0  ;;  %v3081_v41 = vpop.f32.mrf.mxu1  ;;  %v1469_v54 = vmax.f32 %v4157_v38, %v4156_v9 }
 0x1a0   : > { %2335 = vst [vmem:[%s4001_s5 + $0xa8] sm:$0xff] %v2303_v12  ;;  %v2302_v29 = vmax.f32 %v2270_v62, 0.0  ;;  %v2273_v63 = vadd.f32 %v3989_v6, %v2234_v56  ;;  %v2233_v58 = vmax.f32 %v1847_v57, %v2162_v11  ;;  %v1850_v59 = vmax.f32 %v1464_v39, %v3013_v40 }
 0x1a1   : > { %v1786_v42 = vpop.f32.mrf.mxu0  ;;  %v2172_v43 = vpop.f32.mrf.mxu1 }
 0x1a2   : > { %2334 = vst [vmem:[%s4001_s5 + $0xa0] sm:$0xff] %v2302_v29  ;;  %v2305_v2 = vmax.f32 %v2273_v63, 0.0  ;;  %v2272_v30 = vadd.f32 %v3989_v6, %v2233_v58  ;;  %v2236_v60 = vmax.f32 %v1850_v59, %v3081_v41  ;;  %v1849_v61 = vmax.f32 %v1463_v28, %v1786_v42 }
 0x1a3   : > { %v3016_v44 = vpop.f32.mrf.mxu0  ;;  %v3084_v45 = vpop.f32.mrf.mxu1 }
 0x1a4   : > { %2337 = vst [vmem:[%s4001_s5 + $0xb8] sm:$0xff] %v2305_v2  ;;  %v2304_v15 = vmax.f32 %v2272_v30, 0.0  ;;  %v2275_v22 = vadd.f32 %v3989_v6, %v2236_v60  ;;  %v2235_v23 = vmax.f32 %v1849_v61, %v2172_v43  ;;  %v1852_v32 = vmax.f32 %v1466_v13, %v3016_v44 }
 0x1a5   : > { %v1796_v0 = vpop.f32.mrf.mxu0  ;;  %v2182_v1 = vpop.f32.mrf.mxu1 }
 0x1a6   : > { %2336 = vst [vmem:[%s4001_s5 + $0xb0] sm:$0xff] %v2304_v15  ;;  %v2307_v16 = vmax.f32 %v2275_v22, 0.0  ;;  %v2274_v17 = vadd.f32 %v3989_v6, %v2235_v23  ;;  %v2238_v4 = vmax.f32 %v1852_v32, %v3084_v45  ;;  %v1851_v48 = vmax.f32 %v1465_v3, %v1796_v0 }
 0x1a7   : > { %v3019_v24 = vpop.f32.mrf.mxu0  ;;  %v3087_v25 = vpop.f32.mrf.mxu1 }
 0x1a8   : > { %2339 = vst [vmem:[%s4001_s5 + $0xc8] sm:$0xff] %v2307_v16  ;;  %v2306_v5 = vmax.f32 %v2274_v17, 0.0  ;;  %v2277_v50 = vadd.f32 %v3989_v6, %v2238_v4  ;;  %v2237_v51 = vmax.f32 %v1851_v48, %v2182_v1  ;;  %v1854_v7 = vmax.f32 %v1468_v47, %v3019_v24 }
 0x1a9   : > { %v1806_v19 = vpop.f32.mrf.mxu0  ;;  %v2192_v52 = vpop.f32.mrf.mxu1 }
 0x1aa   : > { %2338 = vst [vmem:[%s4001_s5 + $0xc0] sm:$0xff] %v2306_v5  ;;  %v2309_v53 = vmax.f32 %v2277_v50, 0.0  ;;  %v2276_v8 = vadd.f32 %v3989_v6, %v2237_v51  ;;  %v2240_v26 = vmax.f32 %v1854_v7, %v3087_v25  ;;  %v1853_v27 = vmax.f32 %v1467_v35, %v1806_v19 }
 0x1ab   : > { %v3022_v55 = vpop.f32.mrf.mxu0  ;;  %v3090_v39 = vpop.f32.mrf.mxu1 }
 0x1ac   : > { %2341 = vst [vmem:[%s4001_s5 + $0xd8] sm:$0xff] %v2309_v53  ;;  %v2308_v10 = vmax.f32 %v2276_v8, 0.0  ;;  %v2279_v11 = vadd.f32 %v3989_v6, %v2240_v26  ;;  %v2239_v12 = vmax.f32 %v1853_v27, %v2192_v52  ;;  %v1856_v62 = vmax.f32 %v1470_v37, %v3022_v55 }
 0x1ad   : > { %v1816_v56 = vpop.f32.mrf.mxu0  ;;  %v2202_v29 = vpop.f32.mrf.mxu1 }
 0x1ae   : > { %2340 = vst [vmem:[%s4001_s5 + $0xd0] sm:$0xff] %v2308_v10  ;;  %v2311_v57 = vmax.f32 %v2279_v11, 0.0  ;;  %v2278_v28 = vadd.f32 %v3989_v6, %v2239_v12  ;;  %v2242_v40 = vmax.f32 %v1856_v62, %v3090_v39  ;;  %v1855_v41 = vmax.f32 %v1469_v54, %v1816_v56 }
 0x1b0   : > { %2343 = vst [vmem:[%s4001_s5 + $0xe8] sm:$0xff] %v2311_v57  ;;  %v2310_v63 = vmax.f32 %v2278_v28, 0.0  ;;  %v2281_v58 = vadd.f32 %v3989_v6, %v2242_v40  ;;  %v2241_v59 = vmax.f32 %v1855_v41, %v2202_v29 }
 0x1b2   : > { %2342 = vst [vmem:[%s4001_s5 + $0xe0] sm:$0xff] %v2310_v63  ;;  %v2313_v20 = vmax.f32 %v2281_v58, 0.0  ;;  %v2280_v21 = vadd.f32 %v3989_v6, %v2241_v59 }
 0x1b4   : > { %2345 = vst [vmem:[%s4001_s5 + $0xf8] sm:$0xff] %v2313_v20  ;;  %v2312_v13 = vmax.f32 %v2280_v21, 0.0 }
 0x1b6   : > { %2344 = vst [vmem:[%s4001_s5 + $0xf0] sm:$0xff] %v2312_v13 }
 0x1b7 PF: > { %p10_p9 = scmp.ge.s32.totalorder %s3176_s16, 4   ;;  %s4158_s12 = smov %s3133_s13 }
 0x1b8   : > { %s4159_s13 = smov %s3185_s19  ;;  %s4160_s14 = smov %s3176_s16 }
 0x1b9   :  { %12 = sbr.rel (!%p10_p9) target bundleno = 2 (0x2), region = 108 }

// kernel: forward.4
= control target key start
LH: loop header
LB: loop body
LE: loop exit
PB: predicated region body
PF: predicated region fallthrough
CT: control target
= control target key end

     0   :  { %v710_v0 = vmov 0.0   ;;  %vm69_vm0 = vcmask 1045504   ;;  %vm47_vm1 = vcmask 179200   ;;  %s1220_s1 = inlined_call_operand.vmem [shape: f32[150,128], index: 1, kind: input, shape index: {}]   ;;  %s1221_s0 = inlined_call_operand.vmem [shape: f32[4,56,150], index: 0, kind: input, shape index: {}]   ;;  %s1222_s2 = inlined_call_operand.vmem [shape: f32[1,128], index: 2, kind: input, shape index: {}]   ;;  %s1223_s3 = inlined_call_operand.vmem [shape: f32[56,128], index: 3, kind: output, shape index: {}]  }
   0x1   :  { %73 = vmatprep.subr.mxu0 %v710_v0  ;;  %209 = vmatprep.subr.mxu1 %v710_v0  ;;  %v736_v1 = vld [vmem:[%s1220_s1 + $0x78] sm:$0xff]  ;;  %v741_v2 = vld [vmem:[%s1220_s1 + $0x70] sm:$0xff]  ;;  %v750_v3 = vld [vmem:[%s1220_s1 + $0x68] sm:$0xff] }
   0x2   :  { %74 = vmatpush1.msra.mxu0 %v736_v1  ;;  %210 = vmatpush1.msra.mxu1 %v736_v1  ;;  %v759_v4 = vld [vmem:[%s1220_s1 + $0x60] sm:$0xff]  ;;  %v768_v5 = vld [vmem:[%s1220_s1 + $0x58] sm:$0xff]  ;;  %v777_v6 = vld [vmem:[%s1220_s1 + $0x50] sm:$0xff] }
   0x3   :  { %75 = vmatprep.subr.mxu0 %v710_v0  ;;  %211 = vmatprep.subr.mxu1 %v710_v0  ;;  %v786_v7 = vld [vmem:[%s1220_s1 + $0x48] sm:$0xff]  ;;  %v795_v8 = vld [vmem:[%s1220_s1 + $0x40] sm:$0xff]  ;;  %v804_v9 = vld [vmem:[%s1220_s1 + $0x38] sm:$0xff] }
   0x4   :  { %76 = vmatpush1.msra.mxu0 %v741_v2  ;;  %212 = vmatpush1.msra.mxu1 %v741_v2  ;;  %v813_v10 = vld [vmem:[%s1220_s1 + $0x30] sm:$0xff]  ;;  %v822_v11 = vld [vmem:[%s1220_s1 + $0x28] sm:$0xff]  ;;  %v831_v12 = vld [vmem:[%s1220_s1 + $0x20] sm:$0xff] }
   0x5   :  { %77 = vmatprep.subr.mxu0 %v710_v0  ;;  %213 = vmatprep.subr.mxu1 %v710_v0  ;;  %v840_v13 = vld [vmem:[%s1220_s1 + $0x18] sm:$0xff]  ;;  %v849_v14 = vld [vmem:[%s1220_s1 + $0x10] sm:$0xff]  ;;  %v858_v15 = vld [vmem:[%s1220_s1 + $0x8] sm:$0xff] }
   0x6   :  { %78 = vmatpush1.msra.mxu0 %v750_v3  ;;  %214 = vmatpush1.msra.mxu1 %v750_v3  ;;  %v867_v16 = vld [vmem:[%s1220_s1] sm:$0xff]  ;;  %v876_v17 = vld [vmem:[%s1220_s1 + $0x90] sm:$0x3f]  ;;  %v885_v18 = vld [vmem:[%s1220_s1 + $0x88] sm:$0xff] }
   0x7   :  { %79 = vmatprep.subr.mxu0 %v710_v0  ;;  %215 = vmatprep.subr.mxu1 %v710_v0  ;;  %v896_v19 = vld [vmem:[%s1220_s1 + $0x80] sm:$0xff]  ;;  %v34_v20 = vld [vmem:[%s1221_s0 + $0x8] sm:$0xff]  ;;  %v643_v22 = vld [vmem:[%s1221_s0 + $0x78] sm:$0xff] }
   0x8   :  { %80 = vmatpush1.msra.mxu0 %v759_v4  ;;  %216 = vmatpush1.msra.mxu1 %v759_v4  ;;  %v33_v21 = vld [vmem:[%s1221_s0] sm:$0xff]  ;;  %v642_v23 = vld [vmem:[%s1221_s0 + $0x70] sm:$0xff]  ;;  %v36_v24 = vld [vmem:[%s1221_s0 + $0x18] sm:$0xff] }
   0x9   :  { %81 = vmatprep.subr.mxu0 %v710_v0  ;;  %217 = vmatprep.subr.mxu1 %v710_v0  ;;  %v35_v25 = vld [vmem:[%s1221_s0 + $0x10] sm:$0xff]  ;;  %v645_v26 = vld [vmem:[%s1221_s0 + $0x88] sm:$0xff]  ;;  %v644_v27 = vld [vmem:[%s1221_s0 + $0x80] sm:$0xff] }
   0xa   :  { %82 = vmatpush1.msra.mxu0 %v768_v5  ;;  %218 = vmatpush1.msra.mxu1 %v768_v5  ;;  %v38_v28 = vld [vmem:[%s1221_s0 + $0x28] sm:$0xff]  ;;  %v37_v29 = vld [vmem:[%s1221_s0 + $0x20] sm:$0xff]  ;;  %v647_v30 = vld [vmem:[%s1221_s0 + $0x98] sm:$0xff] }
   0xb   :  { %83 = vmatprep.subr.mxu0 %v710_v0  ;;  %219 = vmatprep.subr.mxu1 %v710_v0  ;;  %v646_v31 = vld [vmem:[%s1221_s0 + $0x90] sm:$0xff]  ;;  %v40_v32 = vld [vmem:[%s1221_s0 + $0x38] sm:$0xff]  ;;  %v649_v34 = vld [vmem:[%s1221_s0 + $0xa8] sm:$0xff] }
   0xc   :  { %84 = vmatpush1.msra.mxu0 %v777_v6  ;;  %220 = vmatpush1.msra.mxu1 %v777_v6  ;;  %v39_v33 = vld [vmem:[%s1221_s0 + $0x30] sm:$0xff]  ;;  %v648_v35 = vld [vmem:[%s1221_s0 + $0xa0] sm:$0xff]  ;;  %v42_v36 = vld [vmem:[%s1221_s0 + $0x48] sm:$0xff] }
   0xd   :  { %85 = vmatprep.subr.mxu0 %v710_v0  ;;  %221 = vmatprep.subr.mxu1 %v710_v0  ;;  %v41_v37 = vld [vmem:[%s1221_s0 + $0x40] sm:$0xff]  ;;  %v651_v38 = vld [vmem:[%s1221_s0 + $0xb8] sm:$0xff]  ;;  %v650_v39 = vld [vmem:[%s1221_s0 + $0xb0] sm:$0xff] }
   0xe   :  { %86 = vmatpush1.msra.mxu0 %v786_v7  ;;  %222 = vmatpush1.msra.mxu1 %v786_v7  ;;  %v44_v40 = vld [vmem:[%s1221_s0 + $0x58] sm:$0xff]  ;;  %v43_v41 = vld [vmem:[%s1221_s0 + $0x50] sm:$0xff]  ;;  %v653_v42 = vld [vmem:[%s1221_s0 + $0xc8] sm:$0xff] }
   0xf   :  { %87 = vmatprep.subr.mxu0 %v710_v0  ;;  %223 = vmatprep.subr.mxu1 %v710_v0  ;;  %v652_v43 = vld [vmem:[%s1221_s0 + $0xc0] sm:$0xff]  ;;  %v46_v44 = vld [vmem:[%s1221_s0 + $0x68] sm:$0xff]  ;;  %v655_v46 = vld [vmem:[%s1221_s0 + $0xd8] sm:$0xff] }
  0x10   :  { %88 = vmatpush1.msra.mxu0 %v795_v8  ;;  %224 = vmatpush1.msra.mxu1 %v795_v8  ;;  %v45_v45 = vld [vmem:[%s1221_s0 + $0x60] sm:$0xff]  ;;  %v654_v47 = vld [vmem:[%s1221_s0 + $0xd0] sm:$0xff]  ;;  %v665_v48 = vld [vmem:[%s1221_s0 + $0xe8] sm:$0xff] }
  0x11   :  { %89 = vmatprep.subr.mxu0 %v710_v0  ;;  %225 = vmatprep.subr.mxu1 %v710_v0  ;;  %v687_v49 = vld [vmem:[%s1221_s0 + $0x158] sm:$0xff]  ;;  %v664_v50 = vld [vmem:[%s1221_s0 + $0xe0] sm:$0xff]  ;;  %v686_v51 = vld [vmem:[%s1221_s0 + $0x150] sm:$0xff] }
  0x12   :  { %90 = vmatpush1.msra.mxu0 %v804_v9  ;;  %226 = vmatpush1.msra.mxu1 %v804_v9  ;;  %v667_v52 = vld [vmem:[%s1221_s0 + $0xf8] sm:$0xff]  ;;  %v689_v53 = vld [vmem:[%s1221_s0 + $0x168] sm:$0xff]  ;;  %v666_v54 = vld [vmem:[%s1221_s0 + $0xf0] sm:$0xff] }
  0x13   :  { %91 = vmatprep.subr.mxu0 %v710_v0  ;;  %227 = vmatprep.subr.mxu1 %v710_v0  ;;  %v688_v55 = vld [vmem:[%s1221_s0 + $0x160] sm:$0xff]  ;;  %v669_v56 = vld [vmem:[%s1221_s0 + $0x108] sm:$0xff]  ;;  %v691_v57 = vld [vmem:[%s1221_s0 + $0x178] sm:$0xff] }
  0x14   :  { %92 = vmatpush1.msra.mxu0 %v813_v10  ;;  %228 = vmatpush1.msra.mxu1 %v813_v10  ;;  %v668_v58 = vld [vmem:[%s1221_s0 + $0x100] sm:$0xff]  ;;  %v690_v59 = vld [vmem:[%s1221_s0 + $0x170] sm:$0xff]  ;;  %v671_v60 = vld [vmem:[%s1221_s0 + $0x118] sm:$0xff] }
  0x15   :  { %93 = vmatprep.subr.mxu0 %v710_v0  ;;  %229 = vmatprep.subr.mxu1 %v710_v0  ;;  %v693_v61 = vld [vmem:[%s1221_s0 + $0x188] sm:$0xff]  ;;  %v670_v62 = vld [vmem:[%s1221_s0 + $0x110] sm:$0xff]  ;;  %v692_v63 = vld [vmem:[%s1221_s0 + $0x180] sm:$0xff] }
  0x16   :  { %94 = vmatpush1.msra.mxu0 %v822_v11  ;;  %230 = vmatpush1.msra.mxu1 %v822_v11 }
  0x17   :  { %95 = vmatprep.subr.mxu0 %v710_v0  ;;  %231 = vmatprep.subr.mxu1 %v710_v0 }
  0x18   :  { %96 = vmatpush1.msra.mxu0 %v831_v12  ;;  %232 = vmatpush1.msra.mxu1 %v831_v12 }
  0x19   :  { %97 = vmatprep.subr.mxu0 %v710_v0  ;;  %233 = vmatprep.subr.mxu1 %v710_v0 }
  0x1a   :  { %98 = vmatpush1.msra.mxu0 %v840_v13  ;;  %234 = vmatpush1.msra.mxu1 %v840_v13 }
  0x1b   :  { %99 = vmatprep.subr.mxu0 %v710_v0  ;;  %235 = vmatprep.subr.mxu1 %v710_v0 }
  0x1c   :  { %100 = vmatpush1.msra.mxu0 %v849_v14  ;;  %236 = vmatpush1.msra.mxu1 %v849_v14 }
  0x1d   :  { %101 = vmatprep.subr.mxu0 %v710_v0  ;;  %237 = vmatprep.subr.mxu1 %v710_v0 }
  0x1e   :  { %102 = vmatpush1.msra.mxu0 %v858_v15  ;;  %238 = vmatpush1.msra.mxu1 %v858_v15 }
  0x1f   :  { %103 = vmatprep.subr.mxu0 %v710_v0  ;;  %239 = vmatprep.subr.mxu1 %v710_v0 }
  0x20   :  { %104 = vmatpush1.msra.mxu0 %v867_v16  ;;  %240 = vmatpush1.msra.mxu1 %v867_v16 }
  0x21   :  { %131 = vmatprep.subr.mxu0 %v710_v0  ;;  %267 = vmatprep.subr.mxu1 %v710_v0 }
  0x22   :  { %634 = vmatpush2.msk.msra.mxu0 %vm69_vm0, %v876_v17  ;;  %656 = vmatpush2.msk.msra.mxu1 %vm69_vm0, %v876_v17 }
  0x23   :  { %133 = vmatprep.subr.mxu0 %v710_v0  ;;  %269 = vmatprep.subr.mxu1 %v710_v0 }
  0x24   :  { %134 = vmatpush2.msra.mxu0 %v885_v18  ;;  %270 = vmatpush2.msra.mxu1 %v885_v18 }
  0x25   :  { %135 = vmatprep.subr.mxu0 %v710_v0  ;;  %271 = vmatprep.subr.mxu1 %v710_v0 }
  0x26   :  { %136 = vmatpush2.msra.mxu0 %v896_v19  ;;  %635 = vmatprep.mubr.msk.f32.mxu0 %vm47_vm1, %v34_v20 }
  0x27   :  { %272 = vmatpush2.msra.mxu1 %v896_v19  ;;  %138 = vmatmul.mubr.f32.vlgmr.msra.gmra.mxu0 %v33_v21 }
  0x28   :  { %657 = vmatprep.mubr.msk.f32.mxu1 %vm47_vm1, %v643_v22  ;;  %352 = vmatprep.subr.mxu0 %v710_v0 }
  0x29   :  { %495 = vmatprep.subr.mxu1 %v710_v0  ;;  %274 = vmatmul.mubr.f32.vlgmr.msra.gmra.mxu1 %v642_v23 }
  0x2a   :  { %353 = vmatpush1.msra.mxu0 %v736_v1  ;;  %496 = vmatpush1.msra.mxu1 %v736_v1  ;;  %v695_v1 = vld [vmem:[%s1221_s0 + $0x198] sm:$0xff] }
  0x2b   :  { %354 = vmatprep.subr.mxu0 %v710_v0  ;;  %497 = vmatprep.subr.mxu1 %v710_v0 }
  0x2c   :  { %355 = vmatpush1.msra.mxu0 %v741_v2  ;;  %498 = vmatpush1.msra.mxu1 %v741_v2  ;;  %v672_v2 = vld [vmem:[%s1221_s0 + $0x120] sm:$0xff] }
  0x2d   :  { %356 = vmatprep.subr.mxu0 %v710_v0  ;;  %499 = vmatprep.subr.mxu1 %v710_v0 }
  0x2e   :  { %357 = vmatpush1.msra.mxu0 %v750_v3  ;;  %500 = vmatpush1.msra.mxu1 %v750_v3  ;;  %v694_v3 = vld [vmem:[%s1221_s0 + $0x190] sm:$0xff] }
  0x2f   :  { %358 = vmatprep.subr.mxu0 %v710_v0  ;;  %501 = vmatprep.subr.mxu1 %v710_v0 }
  0x30   :  { %359 = vmatpush1.msra.mxu0 %v759_v4  ;;  %502 = vmatpush1.msra.mxu1 %v759_v4  ;;  %v675_v4 = vld [vmem:[%s1221_s0 + $0x138] sm:$0xff] }
  0x31   :  { %360 = vmatprep.subr.mxu0 %v710_v0  ;;  %503 = vmatprep.subr.mxu1 %v710_v0 }
  0x32   :  { %361 = vmatpush1.msra.mxu0 %v768_v5  ;;  %504 = vmatpush1.msra.mxu1 %v768_v5  ;;  %v697_v5 = vld [vmem:[%s1221_s0 + $0x1a8] sm:$0xff] }
  0x33   :  { %362 = vmatprep.subr.mxu0 %v710_v0  ;;  %505 = vmatprep.subr.mxu1 %v710_v0 }
  0x34   :  { %636 = vmatprep.mubr.msk.f32.mxu0 %vm47_vm1, %v36_v24  ;;  %363 = vmatpush1.msra.mxu0 %v777_v6 }
  0x35   :  { %506 = vmatpush1.msra.mxu1 %v777_v6  ;;  %143 = vmatmul.mubr.f32.gmra.mxu0 %v35_v25  ;;  %v674_v6 = vld [vmem:[%s1221_s0 + $0x130] sm:$0xff] }
  0x36   :  { %364 = vmatprep.subr.mxu0 %v710_v0  ;;  %507 = vmatprep.subr.mxu1 %v710_v0 }
  0x37   :  { %658 = vmatprep.mubr.msk.f32.mxu1 %vm47_vm1, %v645_v26  ;;  %365 = vmatpush1.msra.mxu0 %v786_v7 }
  0x38   :  { %508 = vmatpush1.msra.mxu1 %v786_v7  ;;  %366 = vmatprep.subr.mxu0 %v710_v0  ;;  %v696_v7 = vld [vmem:[%s1221_s0 + $0x1a0] sm:$0xff] }
  0x39   :  { %279 = vmatmul.mubr.f32.gmra.mxu1 %v644_v27  ;;  %509 = vmatprep.subr.mxu1 %v710_v0 }
  0x3a   :  { %637 = vmatprep.mubr.msk.f32.mxu0 %vm47_vm1, %v38_v28  ;;  %367 = vmatpush1.msra.mxu0 %v795_v8 }
  0x3b   :  { %510 = vmatpush1.msra.mxu1 %v795_v8  ;;  %148 = vmatmul.mubr.f32.gmra.mxu0 %v37_v29  ;;  %v677_v8 = vld [vmem:[%s1221_s0 + $0x148] sm:$0xff] }
  0x3c   :  { %368 = vmatprep.subr.mxu0 %v710_v0  ;;  %511 = vmatprep.subr.mxu1 %v710_v0 }
  0x3d   :  { %659 = vmatprep.mubr.msk.f32.mxu1 %vm47_vm1, %v647_v30  ;;  %369 = vmatpush1.msra.mxu0 %v804_v9 }
  0x3e   :  { %512 = vmatpush1.msra.mxu1 %v804_v9  ;;  %370 = vmatprep.subr.mxu0 %v710_v0  ;;  %v699_v9 = vld [vmem:[%s1221_s0 + $0x1b8] sm:$0xff] }
  0x3f   :  { %284 = vmatmul.mubr.f32.gmra.mxu1 %v646_v31  ;;  %513 = vmatprep.subr.mxu1 %v710_v0 }
  0x40   :  { %638 = vmatprep.mubr.msk.f32.mxu0 %vm47_vm1, %v40_v32  ;;  %371 = vmatpush1.msra.mxu0 %v813_v10 }
  0x41   :  { %514 = vmatpush1.msra.mxu1 %v813_v10  ;;  %153 = vmatmul.mubr.f32.gmra.mxu0 %v39_v33  ;;  %v676_v10 = vld [vmem:[%s1221_s0 + $0x140] sm:$0xff] }
  0x42   :  { %372 = vmatprep.subr.mxu0 %v710_v0  ;;  %515 = vmatprep.subr.mxu1 %v710_v0 }
  0x43   :  { %660 = vmatprep.mubr.msk.f32.mxu1 %vm47_vm1, %v649_v34  ;;  %373 = vmatpush1.msra.mxu0 %v822_v11 }
  0x44   :  { %516 = vmatpush1.msra.mxu1 %v822_v11  ;;  %374 = vmatprep.subr.mxu0 %v710_v0  ;;  %v698_v11 = vld [vmem:[%s1221_s0 + $0x1b0] sm:$0xff] }
  0x45   :  { %289 = vmatmul.mubr.f32.gmra.mxu1 %v648_v35  ;;  %517 = vmatprep.subr.mxu1 %v710_v0 }
  0x46   :  { %639 = vmatprep.mubr.msk.f32.mxu0 %vm47_vm1, %v42_v36  ;;  %375 = vmatpush1.msra.mxu0 %v831_v12 }
  0x47   :  { %518 = vmatpush1.msra.mxu1 %v831_v12  ;;  %158 = vmatmul.mubr.f32.gmra.mxu0 %v41_v37 }
  0x48   :  { %376 = vmatprep.subr.mxu0 %v710_v0  ;;  %519 = vmatprep.subr.mxu1 %v710_v0 }
  0x49   :  { %661 = vmatprep.mubr.msk.f32.mxu1 %vm47_vm1, %v651_v38  ;;  %377 = vmatpush1.msra.mxu0 %v840_v13 }
  0x4a   :  { %520 = vmatpush1.msra.mxu1 %v840_v13  ;;  %378 = vmatprep.subr.mxu0 %v710_v0 }
  0x4b   :  { %294 = vmatmul.mubr.f32.gmra.mxu1 %v650_v39  ;;  %521 = vmatprep.subr.mxu1 %v710_v0 }
  0x4c   :  { %640 = vmatprep.mubr.msk.f32.mxu0 %vm47_vm1, %v44_v40  ;;  %379 = vmatpush1.msra.mxu0 %v849_v14 }
  0x4d   :  { %522 = vmatpush1.msra.mxu1 %v849_v14  ;;  %163 = vmatmul.mubr.f32.gmra.mxu0 %v43_v41 }
  0x4e   :  { %380 = vmatprep.subr.mxu0 %v710_v0  ;;  %523 = vmatprep.subr.mxu1 %v710_v0 }
  0x4f   :  { %662 = vmatprep.mubr.msk.f32.mxu1 %vm47_vm1, %v653_v42  ;;  %381 = vmatpush1.msra.mxu0 %v858_v15 }
  0x50   :  { %524 = vmatpush1.msra.mxu1 %v858_v15  ;;  %382 = vmatprep.subr.mxu0 %v710_v0 }
  0x51   :  { %299 = vmatmul.mubr.f32.gmra.mxu1 %v652_v43  ;;  %525 = vmatprep.subr.mxu1 %v710_v0 }
  0x52   :  { %641 = vmatprep.mubr.msk.f32.mxu0 %vm47_vm1, %v46_v44  ;;  %383 = vmatpush1.msra.mxu0 %v867_v16  ;;  %v1187_v44 = vld [vmem:[%s1222_s2] ss:$0 sm:$0xff] }
  0x53   :  { %526 = vmatpush1.msra.mxu1 %v867_v16  ;;  %168 = vmatmul.mubr.f32.gmra.mxu0 %v45_v45 }
  0x54   :  { %410 = vmatprep.subr.mxu0 %v710_v0  ;;  %553 = vmatprep.subr.mxu1 %v710_v0 }
  0x55   :  { %663 = vmatprep.mubr.msk.f32.mxu1 %vm47_vm1, %v655_v46  ;;  %678 = vmatpush2.msk.msra.mxu0 %vm69_vm0, %v876_v17 }
  0x56   :  { %700 = vmatpush2.msk.msra.mxu1 %vm69_vm0, %v876_v17  ;;  %412 = vmatprep.subr.mxu0 %v710_v0 }
  0x57   :  { %304 = vmatmul.mubr.f32.gmra.mxu1 %v654_v47  ;;  %555 = vmatprep.subr.mxu1 %v710_v0 }
  0x58   :  { %413 = vmatpush2.msra.mxu0 %v885_v18  ;;  %556 = vmatpush2.msra.mxu1 %v885_v18 }
  0x59   :  { %414 = vmatprep.subr.mxu0 %v710_v0  ;;  %557 = vmatprep.subr.mxu1 %v710_v0  ;;  %v673_v0 = vld [vmem:[%s1221_s0 + $0x128] sm:$0xff] }
  0x5a   :  { %415 = vmatpush2.msra.mxu0 %v896_v19  ;;  %679 = vmatprep.mubr.msk.f32.mxu0 %vm47_vm1, %v665_v48 }
  0x5b   :  { %558 = vmatpush2.msra.mxu1 %v896_v19  ;;  %701 = vmatprep.mubr.msk.f32.mxu1 %vm47_vm1, %v687_v49 }
  0x5c   :  { %417 = vmatmul.mubr.f32.vlgmr.msra.gmra.mxu0 %v664_v50  ;;  %560 = vmatmul.mubr.f32.vlgmr.msra.gmra.mxu1 %v686_v51 }
  0x5d   :  { %680 = vmatprep.mubr.msk.f32.mxu0 %vm47_vm1, %v667_v52  ;;  %702 = vmatprep.mubr.msk.f32.mxu1 %vm47_vm1, %v689_v53 }
  0x60   :  { %422 = vmatmul.mubr.f32.gmra.mxu0 %v666_v54  ;;  %565 = vmatmul.mubr.f32.gmra.mxu1 %v688_v55 }
  0x61   :  { %681 = vmatprep.mubr.msk.f32.mxu0 %vm47_vm1, %v669_v56  ;;  %703 = vmatprep.mubr.msk.f32.mxu1 %vm47_vm1, %v691_v57 }
  0x64   :  { %427 = vmatmul.mubr.f32.gmra.mxu0 %v668_v58  ;;  %570 = vmatmul.mubr.f32.gmra.mxu1 %v690_v59 }
  0x65   :  { %682 = vmatprep.mubr.msk.f32.mxu0 %vm47_vm1, %v671_v60  ;;  %704 = vmatprep.mubr.msk.f32.mxu1 %vm47_vm1, %v693_v61 }
  0x68   :  { %432 = vmatmul.mubr.f32.gmra.mxu0 %v670_v62  ;;  %575 = vmatmul.mubr.f32.gmra.mxu1 %v692_v63 }
  0x69   :  { %683 = vmatprep.mubr.msk.f32.mxu0 %vm47_vm1, %v673_v0  ;;  %705 = vmatprep.mubr.msk.f32.mxu1 %vm47_vm1, %v695_v1 }
  0x6c   :  { %437 = vmatmul.mubr.f32.gmra.mxu0 %v672_v2  ;;  %580 = vmatmul.mubr.f32.gmra.mxu1 %v694_v3 }
  0x6d   :  { %684 = vmatprep.mubr.msk.f32.mxu0 %vm47_vm1, %v675_v4  ;;  %706 = vmatprep.mubr.msk.f32.mxu1 %vm47_vm1, %v697_v5 }
  0x70   :  { %442 = vmatmul.mubr.f32.gmra.mxu0 %v674_v6  ;;  %585 = vmatmul.mubr.f32.gmra.mxu1 %v696_v7 }
  0x71   :  { %685 = vmatprep.mubr.msk.f32.mxu0 %vm47_vm1, %v677_v8  ;;  %707 = vmatprep.mubr.msk.f32.mxu1 %vm47_vm1, %v699_v9 }
  0x74   :  { %447 = vmatmul.mubr.f32.gmra.mxu0 %v676_v10  ;;  %590 = vmatmul.mubr.f32.gmra.mxu1 %v698_v11 }
  0xe7   :  { %v139_v12 = vpop.f32.mrf.mxu0 }
  0xe9   :  { %v275_v13 = vpop.f32.mrf.mxu1  ;;  %v141_v14 = vpop.f32.mrf.mxu0 }
  0xea   :  { %v309_v40 = vmax.f32 %v139_v12, %v275_v13 }
  0xeb   :  { %v277_v15 = vpop.f32.mrf.mxu1 }
  0xf5   :  { %v144_v16 = vpop.f32.mrf.mxu0 }
  0xf7   :  { %v146_v17 = vpop.f32.mrf.mxu0 }
  0xf9   :  { %v280_v18 = vpop.f32.mrf.mxu1 }
  0xfa   :  { %v310_v47 = vmax.f32 %v144_v16, %v280_v18 }
  0xfb   :  { %v149_v19 = vpop.f32.mrf.mxu0  ;;  %v282_v20 = vpop.f32.mrf.mxu1 }
  0xfd   :  { %v151_v21 = vpop.f32.mrf.mxu0 }
  0xff   :  { %v285_v22 = vpop.f32.mrf.mxu1 }
 0x100   :  { %v311_v55 = vmax.f32 %v149_v19, %v285_v22 }
 0x101   :  { %v154_v23 = vpop.f32.mrf.mxu0  ;;  %v287_v24 = vpop.f32.mrf.mxu1 }
 0x103   :  { %v156_v25 = vpop.f32.mrf.mxu0 }
 0x105   :  { %v290_v26 = vpop.f32.mrf.mxu1 }
 0x106   :  { %v312_v0 = vmax.f32 %v154_v23, %v290_v26 }
 0x107   :  { %v159_v27 = vpop.f32.mrf.mxu0  ;;  %v292_v28 = vpop.f32.mrf.mxu1 }
 0x109   :  { %v161_v29 = vpop.f32.mrf.mxu0 }
 0x10b   :  { %v295_v30 = vpop.f32.mrf.mxu1 }
 0x10c   :  { %v313_v9 = vmax.f32 %v159_v27, %v295_v30 }
 0x10d   :  { %v1178_v31 = vpop.f32.mrf.mxu0  ;;  %v297_v32 = vpop.f32.mrf.mxu1 }
 0x10f   :  { %v166_v33 = vpop.f32.mrf.mxu0 }
 0x111   :  { %v300_v34 = vpop.f32.mrf.mxu1 }
 0x112   :  { %v314_v18 = vmax.f32 %v1178_v31, %v300_v34 }
 0x113   :  { %v1180_v35 = vpop.f32.mrf.mxu0  ;;  %v302_v36 = vpop.f32.mrf.mxu1 }
 0x115   :  { %v171_v37 = vpop.f32.mrf.mxu0 }
 0x117   :  { %v1182_v38 = vpop.f32.mrf.mxu1 }
 0x118   :  { %v315_v27 = vmax.f32 %v1180_v35, %v1182_v38 }
 0x119   :  { %v307_v39 = vpop.f32.mrf.mxu1 }
 0x11c   :  { %v418_v41 = vpop.f32.mrf.mxu0  ;;  %v561_v42 = vpop.f32.mrf.mxu1 }
 0x11d   :  { %v452_v43 = vmax.f32 %v309_v40, %v418_v41 }
 0x11e   :  { %v420_v45 = vpop.f32.mrf.mxu0  ;;  %v563_v46 = vpop.f32.mrf.mxu1 }
 0x11f   :  { %v595_v48 = vmax.f32 %v452_v43, %v561_v42 }
 0x120   :  { %v423_v49 = vpop.f32.mrf.mxu0  ;;  %v566_v50 = vpop.f32.mrf.mxu1 }
 0x121   :  { %v609_v51 = vadd.f32 %v1187_v44, %v595_v48  ;;  %v453_v52 = vmax.f32 %v310_v47, %v423_v49 }
 0x122   :  { %v425_v53 = vpop.f32.mrf.mxu0  ;;  %v568_v54 = vpop.f32.mrf.mxu1 }
 0x123   :  { %v616_v56 = vmax.f32 %v609_v51, 0.0  ;;  %v596_v57 = vmax.f32 %v453_v52, %v566_v50 }
 0x124   :  { %v428_v58 = vpop.f32.mrf.mxu0  ;;  %v571_v59 = vpop.f32.mrf.mxu1 }
 0x125   :  { %623 = vst [vmem:[%s1223_s3] sm:$0xff] %v616_v56  ;;  %v610_v60 = vadd.f32 %v1187_v44, %v596_v57  ;;  %v454_v61 = vmax.f32 %v311_v55, %v428_v58 }
 0x126   :  { %v430_v62 = vpop.f32.mrf.mxu0  ;;  %v573_v63 = vpop.f32.mrf.mxu1 }
 0x127   :  { %v617_v1 = vmax.f32 %v610_v60, 0.0  ;;  %v597_v2 = vmax.f32 %v454_v61, %v571_v59 }
 0x128   :  { %v433_v3 = vpop.f32.mrf.mxu0  ;;  %v576_v4 = vpop.f32.mrf.mxu1 }
 0x129   :  { %624 = vst [vmem:[%s1223_s3 + $0x8] sm:$0xff] %v617_v1  ;;  %v611_v5 = vadd.f32 %v1187_v44, %v597_v2  ;;  %v455_v6 = vmax.f32 %v312_v0, %v433_v3 }
 0x12a   :  { %v435_v7 = vpop.f32.mrf.mxu0  ;;  %v578_v8 = vpop.f32.mrf.mxu1 }
 0x12b   :  { %v618_v10 = vmax.f32 %v611_v5, 0.0  ;;  %v598_v11 = vmax.f32 %v455_v6, %v576_v4 }
 0x12c   :  { %v438_v12 = vpop.f32.mrf.mxu0  ;;  %v581_v13 = vpop.f32.mrf.mxu1 }
 0x12d   :  { %625 = vst [vmem:[%s1223_s3 + $0x10] sm:$0xff] %v618_v10  ;;  %v612_v14 = vadd.f32 %v1187_v44, %v598_v11  ;;  %v456_v15 = vmax.f32 %v313_v9, %v438_v12 }
 0x12e   :  { %v440_v16 = vpop.f32.mrf.mxu0  ;;  %v583_v17 = vpop.f32.mrf.mxu1 }
 0x12f   :  { %v619_v19 = vmax.f32 %v612_v14, 0.0  ;;  %v599_v20 = vmax.f32 %v456_v15, %v581_v13 }
 0x130   :  { %v443_v21 = vpop.f32.mrf.mxu0  ;;  %v586_v22 = vpop.f32.mrf.mxu1 }
 0x131   :  { %626 = vst [vmem:[%s1223_s3 + $0x18] sm:$0xff] %v619_v19  ;;  %v613_v23 = vadd.f32 %v1187_v44, %v599_v20  ;;  %v457_v24 = vmax.f32 %v314_v18, %v443_v21 }
 0x132   :  { %v445_v25 = vpop.f32.mrf.mxu0  ;;  %v588_v26 = vpop.f32.mrf.mxu1 }
 0x133   :  { %v620_v28 = vmax.f32 %v613_v23, 0.0  ;;  %v600_v29 = vmax.f32 %v457_v24, %v586_v22 }
 0x134   :  { %v448_v30 = vpop.f32.mrf.mxu0  ;;  %v591_v31 = vpop.f32.mrf.mxu1 }
 0x135   :  { %627 = vst [vmem:[%s1223_s3 + $0x20] sm:$0xff] %v620_v28  ;;  %v614_v32 = vadd.f32 %v1187_v44, %v600_v29  ;;  %v458_v33 = vmax.f32 %v315_v27, %v448_v30 }
 0x136   :  { %v450_v34 = vpop.f32.mrf.mxu0  ;;  %v593_v36 = vpop.f32.mrf.mxu1 }
 0x137   :  { %v621_v37 = vmax.f32 %v614_v32, 0.0  ;;  %v601_v39 = vmax.f32 %v458_v33, %v591_v31 }
 0x139   :  { %628 = vst [vmem:[%s1223_s3 + $0x28] sm:$0xff] %v621_v37  ;;  %v615_v35 = vadd.f32 %v1187_v44, %v601_v39 }
 0x13b   :  { %v622_v38 = vmax.f32 %v615_v35, 0.0 }
 0x13d   :  { %629 = vst [vmem:[%s1223_s3 + $0x30] sm:$0xff] %v622_v38 }

// kernel: forward.5
= control target key start
LH: loop header
LB: loop body
LE: loop exit
PB: predicated region body
PF: predicated region fallthrough
CT: control target
= control target key end

     0   :  { %v569_v1 = vmov 0.0   ;;  %vm87_vm0 = vcmask 130048   ;;  %vm570_vm1 = vmmov 0   ;;  %s933_s1 = inlined_call_operand.vmem [shape: f32[400,128], index: 1, kind: input, shape index: {}]   ;;  %s934_s0 = inlined_call_operand.vmem [shape: f32[8,400], index: 0, kind: input, shape index: {}]   ;;  %s935_s3 = inlined_call_operand.vmem [shape: f32[128,128], index: 3, kind: input, shape index: {}]   ;;  %s936_s5 = inlined_call_operand.vmem [shape: f32[128,128], index: 5, kind: input, shape index: {}]   ;;  %s937_s2 = inlined_call_operand.vmem [shape: f32[1,128], index: 2, kind: input, shape index: {}]   ;;  %s938_s4 = inlined_call_operand.vmem [shape: f32[1,128], index: 4, kind: input, shape index: {}]   ;;  %s939_s6 = inlined_call_operand.vmem [shape: f32[1,128], index: 6, kind: input, shape index: {}]   ;;  %s940_s7 = inlined_call_operand.vmem [shape: f32[8,128], index: 7, kind: output, shape index: {}]  }
   0x1   :  { %v61_v0 = vld [vmem:[%s933_s1 + $0xf8] sm:$0xff]  ;;  %161 = vmatprep.subr.mxu1 %v569_v1  ;;  %v60_v4 = vld [vmem:[%s933_s1 + $0xf0] sm:$0xff]  ;;  %v59_v7 = vld [vmem:[%s933_s1 + $0xe8] sm:$0xff] }
   0x2   :  { %v45_v2 = vld [vmem:[%s933_s1 + $0x78] sm:$0xff]  ;;  %428 = vmatprep.subr.mxu0 %v61_v0  ;;  %v44_v5 = vld [vmem:[%s933_s1 + $0x70] sm:$0xff]  ;;  %v75_v8 = vld [vmem:[%s933_s1 + $0x168] sm:$0xff] }
   0x3   :  { %v77_v3 = vld [vmem:[%s933_s1 + $0x178] sm:$0xff]  ;;  %v76_v6 = vld [vmem:[%s933_s1 + $0x170] sm:$0xff]  ;;  %429 = vmatpush3.msra.mxu0 %v45_v2  ;;  %v43_v9 = vld [vmem:[%s933_s1 + $0x68] sm:$0xff] }
   0x4   :  { %162 = vmatpush1.msra.mxu1 %v77_v3  ;;  %430 = vmatprep.subr.mxu0 %v60_v4  ;;  %v58_v10 = vld [vmem:[%s933_s1 + $0xe0] sm:$0xff]  ;;  %v57_v13 = vld [vmem:[%s933_s1 + $0xd8] sm:$0xff]  ;;  %v56_v16 = vld [vmem:[%s933_s1 + $0xd0] sm:$0xff] }
   0x5   :  { %163 = vmatprep.subr.mxu1 %v569_v1  ;;  %431 = vmatpush3.msra.mxu0 %v44_v5  ;;  %v74_v11 = vld [vmem:[%s933_s1 + $0x160] sm:$0xff]  ;;  %v73_v14 = vld [vmem:[%s933_s1 + $0x158] sm:$0xff]  ;;  %v72_v17 = vld [vmem:[%s933_s1 + $0x150] sm:$0xff] }
   0x6   :  { %164 = vmatpush1.msra.mxu1 %v76_v6  ;;  %432 = vmatprep.subr.mxu0 %v59_v7  ;;  %v42_v12 = vld [vmem:[%s933_s1 + $0x60] sm:$0xff]  ;;  %v41_v15 = vld [vmem:[%s933_s1 + $0x58] sm:$0xff]  ;;  %v40_v18 = vld [vmem:[%s933_s1 + $0x50] sm:$0xff] }
   0x7   :  { %165 = vmatprep.subr.mxu1 %v569_v1  ;;  %433 = vmatpush3.msra.mxu0 %v43_v9  ;;  %v55_v19 = vld [vmem:[%s933_s1 + $0xc8] sm:$0xff]  ;;  %v54_v22 = vld [vmem:[%s933_s1 + $0xc0] sm:$0xff]  ;;  %v53_v25 = vld [vmem:[%s933_s1 + $0xb8] sm:$0xff] }
   0x8   :  { %166 = vmatpush1.msra.mxu1 %v75_v8  ;;  %434 = vmatprep.subr.mxu0 %v58_v10  ;;  %v71_v20 = vld [vmem:[%s933_s1 + $0x148] sm:$0xff]  ;;  %v70_v23 = vld [vmem:[%s933_s1 + $0x140] sm:$0xff]  ;;  %v69_v26 = vld [vmem:[%s933_s1 + $0x138] sm:$0xff] }
   0x9   :  { %167 = vmatprep.subr.mxu1 %v569_v1  ;;  %435 = vmatpush3.msra.mxu0 %v42_v12  ;;  %v39_v21 = vld [vmem:[%s933_s1 + $0x48] sm:$0xff]  ;;  %v38_v24 = vld [vmem:[%s933_s1 + $0x40] sm:$0xff]  ;;  %v37_v27 = vld [vmem:[%s933_s1 + $0x38] sm:$0xff] }
   0xa   :  { %168 = vmatpush1.msra.mxu1 %v74_v11  ;;  %436 = vmatprep.subr.mxu0 %v57_v13  ;;  %v52_v28 = vld [vmem:[%s933_s1 + $0xb0] sm:$0xff]  ;;  %v51_v31 = vld [vmem:[%s933_s1 + $0xa8] sm:$0xff]  ;;  %v50_v34 = vld [vmem:[%s933_s1 + $0xa0] sm:$0xff] }
   0xb   :  { %169 = vmatprep.subr.mxu1 %v569_v1  ;;  %437 = vmatpush3.msra.mxu0 %v41_v15  ;;  %v68_v29 = vld [vmem:[%s933_s1 + $0x130] sm:$0xff]  ;;  %v67_v32 = vld [vmem:[%s933_s1 + $0x128] sm:$0xff]  ;;  %v66_v35 = vld [vmem:[%s933_s1 + $0x120] sm:$0xff] }
   0xc   :  { %170 = vmatpush1.msra.mxu1 %v73_v14  ;;  %438 = vmatprep.subr.mxu0 %v56_v16  ;;  %v36_v30 = vld [vmem:[%s933_s1 + $0x30] sm:$0xff]  ;;  %v35_v33 = vld [vmem:[%s933_s1 + $0x28] sm:$0xff]  ;;  %v34_v36 = vld [vmem:[%s933_s1 + $0x20] sm:$0xff] }
   0xd   :  { %171 = vmatprep.subr.mxu1 %v569_v1  ;;  %439 = vmatpush3.msra.mxu0 %v40_v18  ;;  %v49_v37 = vld [vmem:[%s933_s1 + $0x98] sm:$0xff]  ;;  %v48_v40 = vld [vmem:[%s933_s1 + $0x90] sm:$0xff]  ;;  %v47_v43 = vld [vmem:[%s933_s1 + $0x88] sm:$0xff] }
   0xe   :  { %172 = vmatpush1.msra.mxu1 %v72_v17  ;;  %440 = vmatprep.subr.mxu0 %v55_v19  ;;  %v65_v38 = vld [vmem:[%s933_s1 + $0x118] sm:$0xff]  ;;  %v64_v41 = vld [vmem:[%s933_s1 + $0x110] sm:$0xff]  ;;  %v63_v44 = vld [vmem:[%s933_s1 + $0x108] sm:$0xff] }
   0xf   :  { %173 = vmatprep.subr.mxu1 %v569_v1  ;;  %441 = vmatpush3.msra.mxu0 %v39_v21  ;;  %v33_v39 = vld [vmem:[%s933_s1 + $0x18] sm:$0xff]  ;;  %v32_v42 = vld [vmem:[%s933_s1 + $0x10] sm:$0xff]  ;;  %v31_v45 = vld [vmem:[%s933_s1 + $0x8] sm:$0xff] }
  0x10   :  { %174 = vmatpush1.msra.mxu1 %v71_v20  ;;  %442 = vmatprep.subr.mxu0 %v54_v22  ;;  %v46_v46 = vld [vmem:[%s933_s1 + $0x80] sm:$0xff]  ;;  %v27_v47 = vld [vmem:[%s934_s0 + $0x8] sm:$0xff]  ;;  %v29_v52 = vld [vmem:[%s934_s0 + $0x18] sm:$0xff] }
  0x11   :  { %175 = vmatprep.subr.mxu1 %v569_v1  ;;  %443 = vmatpush3.msra.mxu0 %v38_v24  ;;  %v30_v48 = vld [vmem:[%s933_s1] sm:$0xff]  ;;  %v79_v51 = vld [vmem:[%s933_s1 + $0x188] sm:$0xff]  ;;  %v247_v54 = vld [vmem:[%s935_s3 + $0x78] sm:$0xff] }
  0x12   :  { %176 = vmatpush1.msra.mxu1 %v70_v23  ;;  %444 = vmatprep.subr.mxu0 %v53_v25  ;;  %v62_v49 = vld [vmem:[%s933_s1 + $0x100] sm:$0xff]  ;;  %v28_v55 = vld [vmem:[%s934_s0 + $0x10] sm:$0xff]  ;;  %v245_v57 = vld [vmem:[%s935_s3 + $0x68] sm:$0xff] }
  0x13   :  { %177 = vmatprep.subr.mxu1 %v569_v1  ;;  %445 = vmatpush3.msra.mxu0 %v37_v27  ;;  %v26_v50 = vld [vmem:[%s934_s0] sm:$0xff]  ;;  %v246_v56 = vld [vmem:[%s935_s3 + $0x70] sm:$0xff]  ;;  %v243_v59 = vld [vmem:[%s935_s3 + $0x58] sm:$0xff] }
  0x14   :  { %178 = vmatpush1.msra.mxu1 %v69_v26  ;;  %446 = vmatprep.subr.mxu0 %v52_v28  ;;  %v78_v53 = vld [vmem:[%s933_s1 + $0x180] sm:$0xff]  ;;  %v242_v60 = vld [vmem:[%s935_s3 + $0x50] sm:$0xff]  ;;  %v241_v61 = vld [vmem:[%s935_s3 + $0x48] sm:$0xff] }
  0x15   :  { %179 = vmatprep.subr.mxu1 %v569_v1  ;;  %447 = vmatpush3.msra.mxu0 %v36_v30  ;;  %v244_v58 = vld [vmem:[%s935_s3 + $0x60] sm:$0xff]  ;;  %v239_v63 = vld [vmem:[%s935_s3 + $0x38] sm:$0xff]  ;;  %v238_v0 = vld [vmem:[%s935_s3 + $0x30] sm:$0xff] }
  0x16   :  { %180 = vmatpush1.msra.mxu1 %v68_v29  ;;  %448 = vmatprep.subr.mxu0 %v51_v31  ;;  %v240_v62 = vld [vmem:[%s935_s3 + $0x40] sm:$0xff]  ;;  %v237_v2 = vld [vmem:[%s935_s3 + $0x28] sm:$0xff]  ;;  %v235_v4 = vld [vmem:[%s935_s3 + $0x18] sm:$0xff] }
  0x17   :  { %181 = vmatprep.subr.mxu1 %v569_v1  ;;  %449 = vmatpush3.msra.mxu0 %v35_v33  ;;  %v236_v3 = vld [vmem:[%s935_s3 + $0x20] sm:$0xff]  ;;  %v234_v5 = vld [vmem:[%s935_s3 + $0x10] sm:$0xff]  ;;  %v233_v6 = vld [vmem:[%s935_s3 + $0x8] sm:$0xff] }
  0x18   :  { %182 = vmatpush1.msra.mxu1 %v67_v32  ;;  %450 = vmatprep.subr.mxu0 %v50_v34  ;;  %v232_v7 = vld [vmem:[%s935_s3] sm:$0xff]  ;;  %v341_v8 = vld [vmem:[%s936_s5 + $0x78] sm:$0xff]  ;;  %v340_v9 = vld [vmem:[%s936_s5 + $0x70] sm:$0xff] }
  0x19   :  { %183 = vmatprep.subr.mxu1 %v569_v1  ;;  %451 = vmatpush3.msra.mxu0 %v34_v36  ;;  %v339_v10 = vld [vmem:[%s936_s5 + $0x68] sm:$0xff]  ;;  %v338_v11 = vld [vmem:[%s936_s5 + $0x60] sm:$0xff]  ;;  %v337_v12 = vld [vmem:[%s936_s5 + $0x58] sm:$0xff] }
  0x1a   :  { %184 = vmatpush1.msra.mxu1 %v66_v35  ;;  %452 = vmatprep.subr.mxu0 %v49_v37  ;;  %v336_v13 = vld [vmem:[%s936_s5 + $0x50] sm:$0xff]  ;;  %v335_v14 = vld [vmem:[%s936_s5 + $0x48] sm:$0xff]  ;;  %v334_v15 = vld [vmem:[%s936_s5 + $0x40] sm:$0xff] }
  0x1b   :  { %185 = vmatprep.subr.mxu1 %v569_v1  ;;  %453 = vmatpush3.msra.mxu0 %v33_v39  ;;  %v333_v16 = vld [vmem:[%s936_s5 + $0x38] sm:$0xff]  ;;  %v332_v17 = vld [vmem:[%s936_s5 + $0x30] sm:$0xff]  ;;  %v331_v18 = vld [vmem:[%s936_s5 + $0x28] sm:$0xff] }
  0x1c   :  { %186 = vmatpush1.msra.mxu1 %v65_v38  ;;  %454 = vmatprep.subr.mxu0 %v48_v40  ;;  %v330_v19 = vld [vmem:[%s936_s5 + $0x20] sm:$0xff]  ;;  %v329_v20 = vld [vmem:[%s936_s5 + $0x18] sm:$0xff]  ;;  %v328_v30 = vld [vmem:[%s936_s5 + $0x10] sm:$0xff] }
  0x1d   :  { %187 = vmatprep.subr.mxu1 %v569_v1  ;;  %455 = vmatpush3.msra.mxu0 %v32_v42  ;;  %v424_v23 = vld [vmem:[%s937_s2] ss:$0 sm:$0xff]  ;;  %v327_v31 = vld [vmem:[%s936_s5 + $0x8] sm:$0xff] }
  0x1e   :  { %188 = vmatpush1.msra.mxu1 %v64_v41  ;;  %456 = vmatprep.subr.mxu0 %v47_v43  ;;  %v326_v32 = vld [vmem:[%s936_s5] sm:$0xff] }
  0x1f   :  { %189 = vmatprep.subr.mxu1 %v569_v1  ;;  %457 = vmatpush3.msra.mxu0 %v31_v45  ;;  %v426_v33 = vld [vmem:[%s938_s4] ss:$0 sm:$0xff] }
  0x20   :  { %190 = vmatpush1.msra.mxu1 %v63_v44  ;;  %458 = vmatprep.subr.mxu0 %v46_v46  ;;  %v427_v38 = vld [vmem:[%s939_s6] ss:$0 sm:$0xff] }
  0x21   :  { %191 = vmatprep.subr.mxu1 %v569_v1  ;;  %155 = vmatprep.mubr.f32.mxu0 %v27_v47 }
  0x22   :  { %459 = vmatpush3.msra.mxu0 %v30_v48  ;;  %192 = vmatpush1.msra.mxu1 %v62_v49 }
  0x23   :  { %156 = vmatmul.mubr.f32.vlgmr.msra.gmra.mxu0 %v26_v50  ;;  %221 = vmatprep.subr.mxu1 %v569_v1 }
  0x24   :  { %222 = vmatpush2.msra.mxu1 %v79_v51  ;;  %425 = vmatprep.mubr.msk.f32.mxu1 %vm87_vm0, %v29_v52 }
  0x25   :  { %223 = vmatprep.subr.mxu1 %v569_v1  ;;  %497 = vmatprep.subr.mxu0 %v569_v1 }
  0x26   :  { %224 = vmatpush2.msra.mxu1 %v78_v53  ;;  %498 = vmatpush3.msra.mxu0 %v247_v54 }
  0x27   :  { %226 = vmatmul.mubr.f32.vlgmr.msra.gmra.mxu1 %v28_v55  ;;  %499 = vmatprep.subr.mxu0 %v569_v1 }
  0x28   :  { %500 = vmatpush3.msra.mxu0 %v246_v56  ;;  %532 = vmatprep.subr.mxu1 %v569_v1 }
  0x29   :  { %501 = vmatprep.subr.mxu0 %v569_v1  ;;  %529 = vmatprep.mubr.msk.f32.mxu0 %vm570_vm1, %v569_v1 }
  0x2a   :  { %502 = vmatpush3.msra.mxu0 %v245_v57  ;;  %564 = vmatprep.mubr.msk.f32.mxu1 %vm570_vm1, %v569_v1 }
  0x2b   :  { %503 = vmatprep.subr.mxu0 %v569_v1  ;;  %533 = vmatpush3.msra.mxu1 %v341_v8 }
  0x2c   :  { %504 = vmatpush3.msra.mxu0 %v244_v58  ;;  %534 = vmatprep.subr.mxu1 %v569_v1 }
  0x2d   :  { %505 = vmatprep.subr.mxu0 %v569_v1  ;;  %535 = vmatpush3.msra.mxu1 %v340_v9 }
  0x2e   :  { %506 = vmatpush3.msra.mxu0 %v243_v59  ;;  %536 = vmatprep.subr.mxu1 %v569_v1 }
  0x2f   :  { %507 = vmatprep.subr.mxu0 %v569_v1  ;;  %537 = vmatpush3.msra.mxu1 %v339_v10 }
  0x30   :  { %508 = vmatpush3.msra.mxu0 %v242_v60  ;;  %538 = vmatprep.subr.mxu1 %v569_v1 }
  0x31   :  { %509 = vmatprep.subr.mxu0 %v569_v1  ;;  %539 = vmatpush3.msra.mxu1 %v338_v11 }
  0x32   :  { %510 = vmatpush3.msra.mxu0 %v241_v61  ;;  %540 = vmatprep.subr.mxu1 %v569_v1 }
  0x33   :  { %511 = vmatprep.subr.mxu0 %v569_v1  ;;  %541 = vmatpush3.msra.mxu1 %v337_v12 }
  0x34   :  { %512 = vmatpush3.msra.mxu0 %v240_v62  ;;  %542 = vmatprep.subr.mxu1 %v569_v1 }
  0x35   :  { %513 = vmatprep.subr.mxu0 %v569_v1  ;;  %543 = vmatpush3.msra.mxu1 %v336_v13 }
  0x36   :  { %514 = vmatpush3.msra.mxu0 %v239_v63  ;;  %544 = vmatprep.subr.mxu1 %v569_v1 }
  0x37   :  { %515 = vmatprep.subr.mxu0 %v569_v1  ;;  %545 = vmatpush3.msra.mxu1 %v335_v14 }
  0x38   :  { %516 = vmatpush3.msra.mxu0 %v238_v0  ;;  %546 = vmatprep.subr.mxu1 %v569_v1 }
  0x39   :  { %517 = vmatprep.subr.mxu0 %v569_v1  ;;  %547 = vmatpush3.msra.mxu1 %v334_v15 }
  0x3a   :  { %518 = vmatpush3.msra.mxu0 %v237_v2  ;;  %548 = vmatprep.subr.mxu1 %v569_v1 }
  0x3b   :  { %519 = vmatprep.subr.mxu0 %v569_v1  ;;  %549 = vmatpush3.msra.mxu1 %v333_v16 }
  0x3c   :  { %520 = vmatpush3.msra.mxu0 %v236_v3  ;;  %550 = vmatprep.subr.mxu1 %v569_v1 }
  0x3d   :  { %521 = vmatprep.subr.mxu0 %v569_v1  ;;  %551 = vmatpush3.msra.mxu1 %v332_v17 }
  0x3e   :  { %522 = vmatpush3.msra.mxu0 %v235_v4  ;;  %552 = vmatprep.subr.mxu1 %v569_v1 }
  0x3f   :  { %523 = vmatprep.subr.mxu0 %v569_v1  ;;  %553 = vmatpush3.msra.mxu1 %v331_v18 }
  0x40   :  { %524 = vmatpush3.msra.mxu0 %v234_v5  ;;  %554 = vmatprep.subr.mxu1 %v569_v1 }
  0x41   :  { %525 = vmatprep.subr.mxu0 %v569_v1  ;;  %555 = vmatpush3.msra.mxu1 %v330_v19 }
  0x42   :  { %526 = vmatpush3.msra.mxu0 %v233_v6  ;;  %556 = vmatprep.subr.mxu1 %v569_v1 }
  0x43   :  { %527 = vmatprep.subr.mxu0 %v569_v1  ;;  %557 = vmatpush3.msra.mxu1 %v329_v20 }
  0x44   :  { %528 = vmatpush3.msra.mxu0 %v232_v7  ;;  %558 = vmatprep.subr.mxu1 %v569_v1 }
  0x45   :  { %559 = vmatpush3.msra.mxu1 %v328_v30 }
  0x46   :  { %560 = vmatprep.subr.mxu1 %v569_v1 }
  0x47   :  { %561 = vmatpush3.msra.mxu1 %v327_v31 }
  0x48   :  { %562 = vmatprep.subr.mxu1 %v569_v1 }
  0x49   :  { %563 = vmatpush3.msra.mxu1 %v326_v32 }
  0xe3   :  { %v460_v21 = vpop.f32.mrf.mxu0 }
  0xe5   :  { %v461_v22 = vpop.f32.mrf.mxu0 }
  0xe6   :  { %v462_v24 = vadd.f32 %v461_v22, %v460_v21 }
  0xe7   :  { %v227_v25 = vpop.f32.mrf.mxu1 }
  0xe8   :  { %v158_v26 = vadd.f32 %v462_v24, %v424_v23 }
  0xe9   :  { %v229_v27 = vpop.f32.mrf.mxu1 }
  0xea   :  { %v228_v28 = vadd.f32 %v227_v25, %v158_v26 }
  0xec   :  { %v231_v29 = vmax.f32 %v228_v28, 0.0 }
  0xee   :  { %530 = vmatmul.mubr.f32.vlgmr.msra.gmra.mxu0 %v231_v29 }
 0x1ae   :  { %v321_v34 = vpop.f32.mrf.mxu0 }
 0x1af   :  { %v322_v35 = vadd.f32 %v426_v33, %v321_v34 }
 0x1b0   :  { %v531_v36 = vpop.f32.mrf.mxu0 }
 0x1b1   :  { %v325_v37 = vmax.f32 %v322_v35, 0.0 }
 0x1b3   :  { %565 = vmatmul.mubr.f32.vlgmr.msra.gmra.mxu1 %v325_v37 }
 0x273   :  { %v415_v39 = vpop.f32.mrf.mxu1 }
 0x274   :  { %v416_v1 = vadd.f32 %v427_v38, %v415_v39 }
 0x275   :  { %v566_v40 = vpop.f32.mrf.mxu1 }
 0x276   :  { %419 = vst [vmem:[%s940_s7] sm:$0xff] %v416_v1 }

</bundles_post_ra>
